<compile_context>
chip_gen: v7x
topology: tpu7x:2x2x1
jax: 0.10.0
libtpu: 0.0.40
codegen_flags: <defaults>
</compile_context>

<pallas_src>
import jax
import jax.numpy as jnp
from jax.experimental import pallas as pl
from jax.experimental.pallas import tpu as pltpu

BN_EPS = 1e-5
LANE = 128


def _round_up(x, m):
    return (x + m - 1) // m * m


def conv_stats_kernel(xp_ref, w_ref, conv_ref, psum_ref, psq_ref, col_scr):
    """One batch image per grid step: build the im2col slab once in VMEM, run a
    single big-K MXU matmul, write the bf16 conv intermediate and per-image
    partial BN statistics (reduced across N in the wrapper)."""
    _, Hp, Wp, Cin = xp_ref.shape            # padded tile: Hp = H+2, Wp = W+2
    H, W = Hp - 2, Wp - 2
    HW, Kp = col_scr.shape
    K9 = 9 * Cin

    # Zero the K-padding columns so the (zero) weight pad rows never multiply
    # non-finite VMEM garbage.  Re-done every step -> no cross-iteration state,
    # which keeps the batch grid axis safely "parallel" (megacore).
    if Kp != K9:
        col_scr[...] = jnp.zeros_like(col_scr)

    # Fused im2col: nine small tap copies into a lane-dense (HW, Kp) slab.
    for kh in range(3):
        for kw in range(3):
            t = kh * 3 + kw
            slab = xp_ref[0, kh:kh + H, kw:kw + W, :].reshape(HW, Cin)
            col_scr[:, t * Cin:(t + 1) * Cin] = slab.astype(col_scr.dtype)

    # Single K = 9*Cin (padded to 128) contraction on the MXU, f32 accumulate.
    acc = jnp.dot(col_scr[...], w_ref[...], preferred_element_type=jnp.float32)

    # bf16 conv intermediate written straight to the output block.
    conv_ref[...] = acc.astype(conv_ref.dtype)

    # Per-image partial BN statistics, taken from the still-hot f32 result.
    s = jnp.sum(acc, axis=0, keepdims=True)                # (1, Cp)
    q = jnp.sum(acc * acc, axis=0, keepdims=True)          # (1, Cp)
    psum_ref[0] = jnp.broadcast_to(s, psum_ref.shape[1:])
    psq_ref[0] = jnp.broadcast_to(q, psq_ref.shape[1:])


def bn_relu_kernel(conv_ref, scale_ref, shift_ref, out_ref):
    """Folded BN affine + ReLU; emits the tile already transposed to NCHW."""
    cout = out_ref.shape[1]
    y = conv_ref[...].astype(jnp.float32) * scale_ref[...] + shift_ref[...]
    y = jnp.maximum(y, 0.0)
    # In-kernel (Cp, HW) transpose + channel un-pad: wrapper only needs a free
    # reshape to (N, Cout, H, W) -- no XLA transpose pass over HBM.
    out_ref[0] = jnp.transpose(y)[:cout, :]


def conv_block_forward(x_nchw, weight, bias, gamma, beta):
    """x_nchw: (N, Cin, H, W); weight: (Cout, Cin, 3, 3). Returns (N, Cout, H, W).

    `bias` is accepted for API parity with nn.Conv2d but unused: training-mode
    BatchNorm's mean subtraction cancels a per-channel conv bias exactly, so
    the forward output is identical (only the internal batch mean differs)."""
    del bias
    N, Cin, H, W = x_nchw.shape
    Cout, _, KH, KW = weight.shape
    assert (KH, KW) == (3, 3), "kernel specialised for 3x3 conv, padding=1"
    HW = H * W
    assert HW % 8 == 0, "H*W must be a multiple of 8 (sublane tiling)"
    Cp = _round_up(Cout, LANE)               # lane-dense output channels
    Kp = _round_up(9 * Cin, LANE)            # lane-dense contraction depth

    # ---- glue: NCHW->NHWC + zero halo (one XLA pass over the small input) ----
    x_nhwc = jnp.transpose(x_nchw, (0, 2, 3, 1)).astype(jnp.float32)
    xp = jnp.pad(x_nhwc, ((0, 0), (1, 1), (1, 1), (0, 0)))   # (N, H+2, W+2, Cin)

    # Tap-major weight matrix: w_mat[(kh*3+kw)*Cin + c, o] = weight[o, c, kh, kw]
    w_mat = jnp.transpose(weight.astype(jnp.float32), (2, 3, 1, 0)).reshape(9 * Cin, Cout)
    w_mat = jnp.pad(w_mat, ((0, Kp - 9 * Cin), (0, Cp - Cout))).astype(jnp.bfloat16)

    # ---- pass 1: fused im2col conv + per-image partial BN statistics ---------
    cost1 = pl.CostEstimate(
        flops=2 * N * HW * Kp * Cp + 4 * N * HW * Cp,
        transcendentals=0,
        bytes_accessed=xp.size * 4 + w_mat.size * 2 + N * HW * Cp * 2
        + 2 * N * 8 * Cp * 4)

    conv_flat, psum, psq = pl.pallas_call(
        conv_stats_kernel,
        out_shape=(
            jax.ShapeDtypeStruct((N * HW, Cp), jnp.bfloat16),   # conv intermediate
            jax.ShapeDtypeStruct((N, 8, Cp), jnp.float32),      # per-image sums
            jax.ShapeDtypeStruct((N, 8, Cp), jnp.float32),      # per-image sum sq
        ),
        grid=(N,),
        in_specs=[
            pl.BlockSpec((1, H + 2, W + 2, Cin), lambda n: (n, 0, 0, 0)),
            pl.BlockSpec((Kp, Cp), lambda n: (0, 0)),
        ],
        out_specs=(
            pl.BlockSpec((HW, Cp), lambda n: (n, 0)),
            pl.BlockSpec((1, 8, Cp), lambda n: (n, 0, 0)),
            pl.BlockSpec((1, 8, Cp), lambda n: (n, 0, 0)),
        ),
        scratch_shapes=[pltpu.VMEM((HW, Kp), jnp.bfloat16)],
        compiler_params=pltpu.CompilerParams(
            dimension_semantics=("parallel",)),   # no resident state -> 2 TCs on v7x
        cost_estimate=cost1,
    )(xp, w_mat)

    # ---- glue: reduce partials, fold BN into per-channel scale / shift -------
    cnt = float(N * HW)
    ch_sum = jnp.sum(psum[:, 0, :], axis=0)        # (Cp,)
    ch_sq = jnp.sum(psq[:, 0, :], axis=0)
    mean = ch_sum / cnt
    # One-pass E[x^2]-E[x]^2 in f32 (clamped); fine at these magnitudes/counts.
    var = jnp.maximum(ch_sq / cnt - mean * mean, 0.0)
    inv_std = jax.lax.rsqrt(var + BN_EPS)
    gamma_p = jnp.pad(gamma.astype(jnp.float32), (0, Cp - Cout))
    beta_p = jnp.pad(beta.astype(jnp.float32), (0, Cp - Cout))
    scale = (gamma_p * inv_std).reshape(1, Cp)
    shift = (beta_p - mean * gamma_p * inv_std).reshape(1, Cp)

    # ---- pass 2: folded BN + ReLU, emitted directly in NCHW ------------------
    cost2 = pl.CostEstimate(
        flops=3 * N * HW * Cp, transcendentals=0,
        bytes_accessed=N * HW * Cp * 2 + N * Cout * HW * 4 + 2 * Cp * 4)

    out_flat = pl.pallas_call(
        bn_relu_kernel,
        out_shape=jax.ShapeDtypeStruct((N, Cout, HW), jnp.float32),
        grid=(N,),
        in_specs=[
            pl.BlockSpec((HW, Cp), lambda n: (n, 0)),
            pl.BlockSpec((1, Cp), lambda n: (0, 0)),
            pl.BlockSpec((1, Cp), lambda n: (0, 0)),
        ],
        out_specs=pl.BlockSpec((1, Cout, HW), lambda n: (n, 0, 0)),
        compiler_params=pltpu.CompilerParams(
            dimension_semantics=("parallel",)),
        cost_estimate=cost2,
    )(conv_flat, scale, shift)

    return out_flat.reshape(N, Cout, H, W)


def reference_forward(x_nchw, weight, bias, gamma, beta):
    """Pure-JAX f32 reference (conv + bias + training-mode BN + ReLU)."""
    conv = jax.lax.conv_general_dilated(
        x_nchw.astype(jnp.float32), weight.astype(jnp.float32),
        window_strides=(1, 1), padding=((1, 1), (1, 1)),
        dimension_numbers=("NCHW", "OIHW", "NCHW"))
    conv = conv + bias.reshape(1, -1, 1, 1)
    mean = jnp.mean(conv, axis=(0, 2, 3), keepdims=True)
    var = jnp.mean((conv - mean) ** 2, axis=(0, 2, 3), keepdims=True)
    y = (conv - mean) * jax.lax.rsqrt(var + BN_EPS)
    y = y * gamma.reshape(1, -1, 1, 1) + beta.reshape(1, -1, 1, 1)
    return jnp.maximum(y, 0.0)


if __name__ == "__main__":
    # Small deterministic example consistent with ConvBlock(in=4, out=8).
    N, Cin, Cout, H, W = 2, 4, 8, 16, 16

    key = jax.random.PRNGKey(0)
    kx, kwt, kb = jax.random.split(key, 3)
    x = jax.random.normal(kx, (N, Cin, H, W), dtype=jnp.float32)

    fan_in = Cin * 9
    bound = 1.0 / (fan_in ** 0.5)
    weight = jax.random.uniform(kwt, (Cout, Cin, 3, 3), jnp.float32, -bound, bound)
    bias = jax.random.uniform(kb, (Cout,), jnp.float32, -bound, bound)
    gamma = jnp.linspace(0.5, 1.5, Cout, dtype=jnp.float32)   # exercise the affine
    beta = jnp.linspace(-0.2, 0.2, Cout, dtype=jnp.float32)

    fwd = jax.jit(conv_block_forward)
    out = jax.block_until_ready(fwd(x, weight, bias, gamma, beta))
    ref = jax.block_until_ready(reference_forward(x, weight, bias, gamma, beta))

    assert out.shape == (N, Cout, H, W)
    # bf16 MXU operands + bf16 conv intermediate vs. the f32 reference.
    assert jnp.allclose(out, ref, atol=5e-2, rtol=5e-2), "mismatch vs reference"

    print("KERNEL_OK")
</pallas_src>

<mosaic_0001>
module attributes {stable_mosaic.version = 11 : i64} {
  func.func @conv_stats_kernel(%arg0: i32, %arg1: memref<1x18x18x4xf32, #tpu.memory_space<vmem>>, %arg2: memref<128x128xbf16, #tpu.memory_space<vmem>>, %arg3: memref<256x128xbf16, #tpu.memory_space<vmem>>, %arg4: memref<1x8x128xf32, #tpu.memory_space<vmem>>, %arg5: memref<1x8x128xf32, #tpu.memory_space<vmem>>, %arg6: memref<256x128xbf16, #tpu.memory_space<vmem>>) attributes {dimension_semantics = [#tpu.dimension_semantics<parallel>], iteration_bounds = array<i64: 2>, scalar_prefetch = 0 : i64, scratch_operands = 1 : i64, tpu.core_type = #tpu.core_type<tc>, window_params = [{transform_indices = @transform_0, window_bounds = array<i64: 1, 18, 18, 4>}, {pipeline_mode = #tpu.pipeline_mode<synchronous>, transform_indices = @transform_1, window_bounds = array<i64: 128, 128>}, {transform_indices = @transform_2, window_bounds = array<i64: 256, 128>}, {transform_indices = @transform_3, window_bounds = array<i64: 1, 8, 128>}, {transform_indices = @transform_4, window_bounds = array<i64: 1, 8, 128>}]} {
    %cst = arith.constant 0.000000e+00 : bf16
    %0 = vector.broadcast %cst : bf16 to vector<256x128xbf16>
    %c0 = arith.constant 0 : index
    %c0_0 = arith.constant 0 : index
    %1 = vector.load %arg6[%c0, %c0_0] : memref<256x128xbf16, #tpu.memory_space<vmem>>, vector<256x128xbf16>
    tpu.vector_store %arg6[%c0, %c0_0], %0 {strides = array<i32>} : memref<256x128xbf16, #tpu.memory_space<vmem>>, vector<256x128xbf16>,
    %c0_1 = arith.constant 0 : index
    %c0_2 = arith.constant 0 : index
    %c0_3 = arith.constant 0 : index
    %c0_4 = arith.constant 0 : index
    %2 = vector.load %arg1[%c0_1, %c0_2, %c0_3, %c0_4] : memref<1x18x18x4xf32, #tpu.memory_space<vmem>>, vector<1x16x16x4xf32>
    %3 = vector.shape_cast %2 : vector<1x16x16x4xf32> to vector<16x16x4xf32>
    %4 = vector.shape_cast %3 : vector<16x16x4xf32> to vector<256x4xf32>
    %5 = arith.truncf %4 : vector<256x4xf32> to vector<256x4xbf16>
    %c0_5 = arith.constant 0 : index
    %c0_6 = arith.constant 0 : index
    %6 = vector.load %arg6[%c0_5, %c0_6] : memref<256x128xbf16, #tpu.memory_space<vmem>>, vector<256x4xbf16>
    tpu.vector_store %arg6[%c0_5, %c0_6], %5 {strides = array<i32>} : memref<256x128xbf16, #tpu.memory_space<vmem>>, vector<256x4xbf16>,
    %c0_7 = arith.constant 0 : index
    %c0_8 = arith.constant 0 : index
    %c1 = arith.constant 1 : index
    %c0_9 = arith.constant 0 : index
    %7 = vector.load %arg1[%c0_7, %c0_8, %c1, %c0_9] : memref<1x18x18x4xf32, #tpu.memory_space<vmem>>, vector<1x16x16x4xf32>
    %8 = vector.shape_cast %7 : vector<1x16x16x4xf32> to vector<16x16x4xf32>
    %9 = vector.shape_cast %8 : vector<16x16x4xf32> to vector<256x4xf32>
    %10 = arith.truncf %9 : vector<256x4xf32> to vector<256x4xbf16>
    %c0_10 = arith.constant 0 : index
    %c4 = arith.constant 4 : index
    %11 = vector.load %arg6[%c0_10, %c4] : memref<256x128xbf16, #tpu.memory_space<vmem>>, vector<256x4xbf16>
    tpu.vector_store %arg6[%c0_10, %c4], %10 {strides = array<i32>} : memref<256x128xbf16, #tpu.memory_space<vmem>>, vector<256x4xbf16>,
    %c0_11 = arith.constant 0 : index
    %c0_12 = arith.constant 0 : index
    %c2 = arith.constant 2 : index
    %c0_13 = arith.constant 0 : index
    %12 = vector.load %arg1[%c0_11, %c0_12, %c2, %c0_13] : memref<1x18x18x4xf32, #tpu.memory_space<vmem>>, vector<1x16x16x4xf32>
    %13 = vector.shape_cast %12 : vector<1x16x16x4xf32> to vector<16x16x4xf32>
    %14 = vector.shape_cast %13 : vector<16x16x4xf32> to vector<256x4xf32>
    %15 = arith.truncf %14 : vector<256x4xf32> to vector<256x4xbf16>
    %c0_14 = arith.constant 0 : index
    %c8 = arith.constant 8 : index
    %16 = vector.load %arg6[%c0_14, %c8] : memref<256x128xbf16, #tpu.memory_space<vmem>>, vector<256x4xbf16>
    tpu.vector_store %arg6[%c0_14, %c8], %15 {strides = array<i32>} : memref<256x128xbf16, #tpu.memory_space<vmem>>, vector<256x4xbf16>,
    %c0_15 = arith.constant 0 : index
    %c1_16 = arith.constant 1 : index
    %c0_17 = arith.constant 0 : index
    %c0_18 = arith.constant 0 : index
    %17 = vector.load %arg1[%c0_15, %c1_16, %c0_17, %c0_18] : memref<1x18x18x4xf32, #tpu.memory_space<vmem>>, vector<1x16x16x4xf32>
    %18 = vector.shape_cast %17 : vector<1x16x16x4xf32> to vector<16x16x4xf32>
    %19 = vector.shape_cast %18 : vector<16x16x4xf32> to vector<256x4xf32>
    %20 = arith.truncf %19 : vector<256x4xf32> to vector<256x4xbf16>
    %c0_19 = arith.constant 0 : index
    %c12 = arith.constant 12 : index
    %21 = vector.load %arg6[%c0_19, %c12] : memref<256x128xbf16, #tpu.memory_space<vmem>>, vector<256x4xbf16>
    tpu.vector_store %arg6[%c0_19, %c12], %20 {strides = array<i32>} : memref<256x128xbf16, #tpu.memory_space<vmem>>, vector<256x4xbf16>,
    %c0_20 = arith.constant 0 : index
    %c1_21 = arith.constant 1 : index
    %c1_22 = arith.constant 1 : index
    %c0_23 = arith.constant 0 : index
    %22 = vector.load %arg1[%c0_20, %c1_21, %c1_22, %c0_23] : memref<1x18x18x4xf32, #tpu.memory_space<vmem>>, vector<1x16x16x4xf32>
    %23 = vector.shape_cast %22 : vector<1x16x16x4xf32> to vector<16x16x4xf32>
    %24 = vector.shape_cast %23 : vector<16x16x4xf32> to vector<256x4xf32>
    %25 = arith.truncf %24 : vector<256x4xf32> to vector<256x4xbf16>
    %c0_24 = arith.constant 0 : index
    %c16 = arith.constant 16 : index
    %26 = vector.load %arg6[%c0_24, %c16] : memref<256x128xbf16, #tpu.memory_space<vmem>>, vector<256x4xbf16>
    tpu.vector_store %arg6[%c0_24, %c16], %25 {strides = array<i32>} : memref<256x128xbf16, #tpu.memory_space<vmem>>, vector<256x4xbf16>,
    %c0_25 = arith.constant 0 : index
    %c1_26 = arith.constant 1 : index
    %c2_27 = arith.constant 2 : index
    %c0_28 = arith.constant 0 : index
    %27 = vector.load %arg1[%c0_25, %c1_26, %c2_27, %c0_28] : memref<1x18x18x4xf32, #tpu.memory_space<vmem>>, vector<1x16x16x4xf32>
    %28 = vector.shape_cast %27 : vector<1x16x16x4xf32> to vector<16x16x4xf32>
    %29 = vector.shape_cast %28 : vector<16x16x4xf32> to vector<256x4xf32>
    %30 = arith.truncf %29 : vector<256x4xf32> to vector<256x4xbf16>
    %c0_29 = arith.constant 0 : index
    %c20 = arith.constant 20 : index
    %31 = vector.load %arg6[%c0_29, %c20] : memref<256x128xbf16, #tpu.memory_space<vmem>>, vector<256x4xbf16>
    tpu.vector_store %arg6[%c0_29, %c20], %30 {strides = array<i32>} : memref<256x128xbf16, #tpu.memory_space<vmem>>, vector<256x4xbf16>,
    %c0_30 = arith.constant 0 : index
    %c2_31 = arith.constant 2 : index
    %c0_32 = arith.constant 0 : index
    %c0_33 = arith.constant 0 : index
    %32 = vector.load %arg1[%c0_30, %c2_31, %c0_32, %c0_33] : memref<1x18x18x4xf32, #tpu.memory_space<vmem>>, vector<1x16x16x4xf32>
    %33 = vector.shape_cast %32 : vector<1x16x16x4xf32> to vector<16x16x4xf32>
    %34 = vector.shape_cast %33 : vector<16x16x4xf32> to vector<256x4xf32>
    %35 = arith.truncf %34 : vector<256x4xf32> to vector<256x4xbf16>
    %c0_34 = arith.constant 0 : index
    %c24 = arith.constant 24 : index
    %36 = vector.load %arg6[%c0_34, %c24] : memref<256x128xbf16, #tpu.memory_space<vmem>>, vector<256x4xbf16>
    tpu.vector_store %arg6[%c0_34, %c24], %35 {strides = array<i32>} : memref<256x128xbf16, #tpu.memory_space<vmem>>, vector<256x4xbf16>,
    %c0_35 = arith.constant 0 : index
    %c2_36 = arith.constant 2 : index
    %c1_37 = arith.constant 1 : index
    %c0_38 = arith.constant 0 : index
    %37 = vector.load %arg1[%c0_35, %c2_36, %c1_37, %c0_38] : memref<1x18x18x4xf32, #tpu.memory_space<vmem>>, vector<1x16x16x4xf32>
    %38 = vector.shape_cast %37 : vector<1x16x16x4xf32> to vector<16x16x4xf32>
    %39 = vector.shape_cast %38 : vector<16x16x4xf32> to vector<256x4xf32>
    %40 = arith.truncf %39 : vector<256x4xf32> to vector<256x4xbf16>
    %c0_39 = arith.constant 0 : index
    %c28 = arith.constant 28 : index
    %41 = vector.load %arg6[%c0_39, %c28] : memref<256x128xbf16, #tpu.memory_space<vmem>>, vector<256x4xbf16>
    tpu.vector_store %arg6[%c0_39, %c28], %40 {strides = array<i32>} : memref<256x128xbf16, #tpu.memory_space<vmem>>, vector<256x4xbf16>,
    %c0_40 = arith.constant 0 : index
    %c2_41 = arith.constant 2 : index
    %c2_42 = arith.constant 2 : index
    %c0_43 = arith.constant 0 : index
    %42 = vector.load %arg1[%c0_40, %c2_41, %c2_42, %c0_43] : memref<1x18x18x4xf32, #tpu.memory_space<vmem>>, vector<1x16x16x4xf32>
    %43 = vector.shape_cast %42 : vector<1x16x16x4xf32> to vector<16x16x4xf32>
    %44 = vector.shape_cast %43 : vector<16x16x4xf32> to vector<256x4xf32>
    %45 = arith.truncf %44 : vector<256x4xf32> to vector<256x4xbf16>
    %c0_44 = arith.constant 0 : index
    %c32 = arith.constant 32 : index
    %46 = vector.load %arg6[%c0_44, %c32] : memref<256x128xbf16, #tpu.memory_space<vmem>>, vector<256x4xbf16>
    tpu.vector_store %arg6[%c0_44, %c32], %45 {strides = array<i32>} : memref<256x128xbf16, #tpu.memory_space<vmem>>, vector<256x4xbf16>,
    %c0_45 = arith.constant 0 : index
    %c0_46 = arith.constant 0 : index
    %47 = vector.load %arg6[%c0_45, %c0_46] : memref<256x128xbf16, #tpu.memory_space<vmem>>, vector<256x128xbf16>
    %c0_47 = arith.constant 0 : index
    %c0_48 = arith.constant 0 : index
    %48 = vector.load %arg2[%c0_47, %c0_48] : memref<128x128xbf16, #tpu.memory_space<vmem>>, vector<128x128xbf16>
    %cst_49 = arith.constant dense<0.000000e+00> : vector<256x128xf32>
    %49 = tpu.matmul %47, %48, %cst_49 {dimension_numbers = #tpu.dot_dimension_numbers<[1], [0], [0], [1], [0, 0, 1, 1], [], []>} : vector<256x128xbf16>, vector<128x128xbf16>, vector<256x128xf32> -> vector<256x128xf32>
    %50 = arith.truncf %49 : vector<256x128xf32> to vector<256x128xbf16>
    %c0_50 = arith.constant 0 : index
    %c0_51 = arith.constant 0 : index
    %51 = vector.load %arg3[%c0_50, %c0_51] : memref<256x128xbf16, #tpu.memory_space<vmem>>, vector<256x128xbf16>
    tpu.vector_store %arg3[%c0_50, %c0_51], %50 {strides = array<i32>} : memref<256x128xbf16, #tpu.memory_space<vmem>>, vector<256x128xbf16>,
    %cst_52 = arith.constant dense<0.000000e+00> : vector<128xf32>
    %52 = vector.multi_reduction <add>, %49, %cst_52 [0] : vector<256x128xf32> to vector<128xf32>
    %53 = vector.shape_cast %52 : vector<128xf32> to vector<1x128xf32>
    %54 = arith.mulf %49, %49 : vector<256x128xf32>
    %cst_53 = arith.constant dense<0.000000e+00> : vector<128xf32>
    %55 = vector.multi_reduction <add>, %54, %cst_53 [0] : vector<256x128xf32> to vector<128xf32>
    %56 = vector.shape_cast %55 : vector<128xf32> to vector<1x128xf32>
    %57 = vector.shape_cast %53 : vector<1x128xf32> to vector<1x128xf32>
    %58 = vector.broadcast %57 : vector<1x128xf32> to vector<8x128xf32>
    %c0_54 = arith.constant 0 : index
    %c0_55 = arith.constant 0 : index
    %c0_56 = arith.constant 0 : index
    %59 = vector.load %arg4[%c0_54, %c0_55, %c0_56] : memref<1x8x128xf32, #tpu.memory_space<vmem>>, vector<1x8x128xf32>
    %60 = vector.shape_cast %59 : vector<1x8x128xf32> to vector<8x128xf32>
    %61 = vector.shape_cast %58 : vector<8x128xf32> to vector<1x8x128xf32>
    tpu.vector_store %arg4[%c0_54, %c0_55, %c0_56], %61 {strides = array<i32>} : memref<1x8x128xf32, #tpu.memory_space<vmem>>, vector<1x8x128xf32>,
    %62 = vector.shape_cast %56 : vector<1x128xf32> to vector<1x128xf32>
    %63 = vector.broadcast %62 : vector<1x128xf32> to vector<8x128xf32>
    %c0_57 = arith.constant 0 : index
    %c0_58 = arith.constant 0 : index
    %c0_59 = arith.constant 0 : index
    %64 = vector.load %arg5[%c0_57, %c0_58, %c0_59] : memref<1x8x128xf32, #tpu.memory_space<vmem>>, vector<1x8x128xf32>
    %65 = vector.shape_cast %64 : vector<1x8x128xf32> to vector<8x128xf32>
    %66 = vector.shape_cast %63 : vector<8x128xf32> to vector<1x8x128xf32>
    tpu.vector_store %arg5[%c0_57, %c0_58, %c0_59], %66 {strides = array<i32>} : memref<1x8x128xf32, #tpu.memory_space<vmem>>, vector<1x8x128xf32>,
    return
  }
  func.func @transform_0(%arg0: i32) -> (i32, i32, i32, i32) {
    %c0_i32 = arith.constant 0 : i32
    %c0_i32_0 = arith.constant 0 : i32
    %c0_i32_1 = arith.constant 0 : i32
    %c0_i32_2 = arith.constant 0 : i32
    return %arg0, %c0_i32, %c0_i32_0, %c0_i32_1 : i32, i32, i32, i32
  }
  func.func @transform_1(%arg0: i32) -> (i32, i32) {
    %c0_i32 = arith.constant 0 : i32
    %c0_i32_0 = arith.constant 0 : i32
    %c0_i32_1 = arith.constant 0 : i32
    return %c0_i32, %c0_i32_0 : i32, i32
  }
  func.func @transform_2(%arg0: i32) -> (i32, i32) {
    %c0_i32 = arith.constant 0 : i32
    %c0_i32_0 = arith.constant 0 : i32
    return %arg0, %c0_i32 : i32, i32
  }
  func.func @transform_3(%arg0: i32) -> (i32, i32, i32) {
    %c0_i32 = arith.constant 0 : i32
    %c0_i32_0 = arith.constant 0 : i32
    %c0_i32_1 = arith.constant 0 : i32
    return %arg0, %c0_i32, %c0_i32_0 : i32, i32, i32
  }
  func.func @transform_4(%arg0: i32) -> (i32, i32, i32) {
    %c0_i32 = arith.constant 0 : i32
    %c0_i32_0 = arith.constant 0 : i32
    %c0_i32_1 = arith.constant 0 : i32
    return %arg0, %c0_i32, %c0_i32_0 : i32, i32, i32
  }
}

module attributes {stable_mosaic.version = 11 : i64} {
  func.func @bn_relu_kernel(%arg0: i32, %arg1: memref<256x128xbf16, #tpu.memory_space<vmem>>, %arg2: memref<1x128xf32, #tpu.memory_space<vmem>>, %arg3: memref<1x128xf32, #tpu.memory_space<vmem>>, %arg4: memref<1x8x256xf32, #tpu.memory_space<vmem>>) attributes {dimension_semantics = [#tpu.dimension_semantics<parallel>], iteration_bounds = array<i64: 2>, scalar_prefetch = 0 : i64, scratch_operands = 0 : i64, tpu.core_type = #tpu.core_type<tc>, window_params = [{transform_indices = @transform_0, window_bounds = array<i64: 256, 128>}, {pipeline_mode = #tpu.pipeline_mode<synchronous>, transform_indices = @transform_1, window_bounds = array<i64: 1, 128>}, {pipeline_mode = #tpu.pipeline_mode<synchronous>, transform_indices = @transform_2, window_bounds = array<i64: 1, 128>}, {transform_indices = @transform_3, window_bounds = array<i64: 1, 8, 256>}]} {
    %c0 = arith.constant 0 : index
    %c0_0 = arith.constant 0 : index
    %0 = vector.load %arg1[%c0, %c0_0] : memref<256x128xbf16, #tpu.memory_space<vmem>>, vector<256x128xbf16>
    %1 = arith.extf %0 : vector<256x128xbf16> to vector<256x128xf32>
    %c0_1 = arith.constant 0 : index
    %c0_2 = arith.constant 0 : index
    %2 = vector.load %arg2[%c0_1, %c0_2] : memref<1x128xf32, #tpu.memory_space<vmem>>, vector<1x128xf32>
    %3 = vector.broadcast %2 : vector<1x128xf32> to vector<256x128xf32>
    %4 = arith.mulf %1, %3 : vector<256x128xf32>
    %c0_3 = arith.constant 0 : index
    %c0_4 = arith.constant 0 : index
    %5 = vector.load %arg3[%c0_3, %c0_4] : memref<1x128xf32, #tpu.memory_space<vmem>>, vector<1x128xf32>
    %6 = vector.broadcast %5 : vector<1x128xf32> to vector<256x128xf32>
    %7 = arith.addf %4, %6 : vector<256x128xf32>
    %cst = arith.constant 0.000000e+00 : f32
    %8 = vector.broadcast %cst : f32 to vector<256x128xf32>
    %9 = arith.maximumf %7, %8 : vector<256x128xf32>
    %10 = tpu.transpose %9, [1, 0] : vector<256x128xf32> -> vector<128x256xf32>
    %11 = vector.extract_strided_slice %10 {offsets = [0, 0], sizes = [8, 256], strides = [1, 1]} : vector<128x256xf32> to vector<8x256xf32>
    %c0_5 = arith.constant 0 : index
    %c0_6 = arith.constant 0 : index
    %c0_7 = arith.constant 0 : index
    %12 = vector.load %arg4[%c0_5, %c0_6, %c0_7] : memref<1x8x256xf32, #tpu.memory_space<vmem>>, vector<1x8x256xf32>
    %13 = vector.shape_cast %12 : vector<1x8x256xf32> to vector<8x256xf32>
    %14 = vector.shape_cast %11 : vector<8x256xf32> to vector<1x8x256xf32>
    tpu.vector_store %arg4[%c0_5, %c0_6, %c0_7], %14 {strides = array<i32>} : memref<1x8x256xf32, #tpu.memory_space<vmem>>, vector<1x8x256xf32>,
    return
  }
  func.func @transform_0(%arg0: i32) -> (i32, i32) {
    %c0_i32 = arith.constant 0 : i32
    %c0_i32_0 = arith.constant 0 : i32
    return %arg0, %c0_i32 : i32, i32
  }
  func.func @transform_1(%arg0: i32) -> (i32, i32) {
    %c0_i32 = arith.constant 0 : i32
    %c0_i32_0 = arith.constant 0 : i32
    %c0_i32_1 = arith.constant 0 : i32
    return %c0_i32, %c0_i32_0 : i32, i32
  }
  func.func @transform_2(%arg0: i32) -> (i32, i32) {
    %c0_i32 = arith.constant 0 : i32
    %c0_i32_0 = arith.constant 0 : i32
    %c0_i32_1 = arith.constant 0 : i32
    return %c0_i32, %c0_i32_0 : i32, i32
  }
  func.func @transform_3(%arg0: i32) -> (i32, i32, i32) {
    %c0_i32 = arith.constant 0 : i32
    %c0_i32_0 = arith.constant 0 : i32
    %c0_i32_1 = arith.constant 0 : i32
    return %arg0, %c0_i32, %c0_i32_0 : i32, i32, i32
  }
}

</mosaic_0001>

<bundles_post_ra>
// kernel: conv_block_forward.3
= control target key start
LH: loop header
LB: loop body
LE: loop exit
PB: predicated region body
PF: predicated region fallthrough
CT: control target
= control target key end

     0   :  { %s597_s12 = smov 0   ;;  %s711_s0 = inlined_call_operand.vmem [shape: bf16[512,128], index: 0, kind: input, shape index: {}]   ;;  %s712_s1 = inlined_call_operand.vmem [shape: f32[1,128], index: 1, kind: input, shape index: {}]   ;;  %s713_s2 = inlined_call_operand.vmem [shape: f32[1,128], index: 2, kind: input, shape index: {}]   ;;  %s714_s3 = inlined_call_operand.vmem [shape: f32[2,8,256], index: 3, kind: output, shape index: {}]  }
   0x1 LB: > { %s603_s13 = sadd.s32 4294967295, %s575_s12   ;;  %p472_p0 = scmp.ge.s32.totalorder %s575_s12, 1  ;;  %s575_s12 = sphi %s597_s12, %s13_s12  }
   0x2   : > { %p138_p1 = scmp.lt.s32.totalorder %s575_s12, 3 }
   0x4   : > { %p139_p2 = pnand %p472_p0, %p138_p1 }
   0x5   : > { %s473_s14 = sshll.u32 (!%p139_p2), %s603_s13, 5  ;;  %v616_v0 = vld [vmem:[%s712_s1] ss:$0 sm:$0xff] (!%p139_p2)  ;;  %p168_p4 = scmp.lt.s32.totalorder (!%p139_p2), %s603_s13, 1 }
   0x6   : > { %142 = sbr.rel (%p139_p2) target bundleno = 156 (0x9c), region = 32  ;;  %p163_p3 = scmp.lt.s32.totalorder (!%p139_p2), %s473_s14, 63  ;;  %v625_v9 = vld [vmem:[%s713_s2] ss:$0 sm:$0xff] (!%p139_p2) }
   0xd   : > { %s716_s14 = smov (!%p163_p3, %s473_s14), 63  ;;  %s718_s13 = smov (!%p168_p4, %s603_s13), 1 }
   0xe   : > { %s474_s15 = sshll.u32 %s716_s14, 2  ;;  %s481_s23 = sshll.u32 %s718_s13, 4 }
   0xf   : > { %s611_s18 = scalar_lea.vmem %s711_s0, %s474_s15  ;;  %s172_s26 = scalar_lea.vmem %s714_s3, %s481_s23 }
  0x10   : > { %v553_v1 = vld [vmem:[%s611_s18 + $0x40] sm:$0xff]   ;;  %v554_v3 = vld [vmem:[%s611_s18 + $0x48] sm:$0xff]   ;;  %v555_v24 = vld [vmem:[%s611_s18 + $0x50] sm:$0xff]  }
  0x11   : > { %v483_v2 = vld [vmem:[%s611_s18] sm:$0xff]   ;;  %v516_v4 = vunpack.c.l.bf16 %v553_v1  ;;  %v517_v6 = vunpack.c.h.bf16 %v553_v1  ;;  %v546_v8 = vld [vmem:[%s611_s18 + $0x8] sm:$0xff]   ;;  %v520_v10 = vunpack.c.l.bf16 %v554_v3  ;;  %v521_v18 = vunpack.c.h.bf16 %v554_v3  ;;  %v547_v25 = vld [vmem:[%s611_s18 + $0x10] sm:$0xff]  }
  0x12   : > { %v484_v5 = vunpack.c.l.bf16 %v483_v2  ;;  %v485_v7 = vunpack.c.h.bf16 %v483_v2  ;;  %v488_v11 = vunpack.c.l.bf16 %v546_v8  ;;  %v489_v19 = vunpack.c.h.bf16 %v546_v8  ;;  %v556_v44 = vld [vmem:[%s611_s18 + $0x58] sm:$0xff]   ;;  %v557_v62 = vld [vmem:[%s611_s18 + $0x60] sm:$0xff]  }
  0x13   : > { %v260_v12 = vmul.f32 %v516_v4, %v616_v0  ;;  %v261_v14 = vmul.f32 %v517_v6, %v616_v0  ;;  %v262_v16 = vmul.f32 %v520_v10, %v616_v0  ;;  %v263_v30 = vmul.f32 %v521_v18, %v616_v0  ;;  %v548_v45 = vld [vmem:[%s611_s18 + $0x18] sm:$0xff]   ;;  %v549_v63 = vld [vmem:[%s611_s18 + $0x20] sm:$0xff]   ;;  %v558_v18 = vld [vmem:[%s611_s18 + $0x68] sm:$0xff]  }
  0x14   : > { %v244_v13 = vmul.f32 %v484_v5, %v616_v0  ;;  %v245_v15 = vmul.f32 %v485_v7, %v616_v0  ;;  %v246_v17 = vmul.f32 %v488_v11, %v616_v0  ;;  %v247_v31 = vmul.f32 %v489_v19, %v616_v0  ;;  %v550_v19 = vld [vmem:[%s611_s18 + $0x28] sm:$0xff]  }
  0x15   : > { %v299_v20 = vadd.f32 %v625_v9, %v260_v12  ;;  %v300_v22 = vadd.f32 %v625_v9, %v261_v14  ;;  %v301_v28 = vadd.f32 %v625_v9, %v262_v16  ;;  %v524_v34 = vunpack.c.l.bf16 %v555_v24 }
  0x16   : > { %v283_v21 = vadd.f32 %v625_v9, %v244_v13  ;;  %v284_v23 = vadd.f32 %v625_v9, %v245_v15  ;;  %v285_v29 = vadd.f32 %v625_v9, %v246_v17  ;;  %v492_v35 = vunpack.c.l.bf16 %v547_v25 }
  0x17   : > { %v331_v26 = vmax.f32 %v299_v20, 0.0  ;;  %v332_v32 = vmax.f32 %v300_v22, 0.0  ;;  %v333_v36 = vmax.f32 %v301_v28, 0.0  ;;  %v302_v37 = vadd.f32 %v625_v9, %v263_v30 }
  0x18   : > { %v315_v27 = vmax.f32 %v283_v21, 0.0  ;;  %v316_v33 = vmax.f32 %v284_v23, 0.0  ;;  %v286_v38 = vadd.f32 %v625_v9, %v247_v31  ;;  %v525_v39 = vunpack.c.h.bf16 %v555_v24 }
  0x19   : > { %379 = vxpose.xlu1.b32.start [1/16] (narrow) %v331_v26, 8  ;;  %v317_v40 = vmax.f32 %v285_v29, 0.0  ;;  %v264_v41 = vmul.f32 %v524_v34, %v616_v0  ;;  %v248_v42 = vmul.f32 %v492_v35, %v616_v0  ;;  %v493_v43 = vunpack.c.h.bf16 %v547_v25 }
  0x1a   : > { %347 = vxpose.xlu0.b32.start [1/16] (narrow) %v315_v27, 8  ;;  %v334_v46 = vmax.f32 %v302_v37, 0.0  ;;  %v265_v47 = vmul.f32 %v525_v39, %v616_v0  ;;  %v528_v48 = vunpack.c.l.bf16 %v556_v44  ;;  %v496_v49 = vunpack.c.l.bf16 %v548_v45  ;;  %v551_v37 = vld [vmem:[%s611_s18 + $0x30] sm:$0xff]  }
  0x1b   : > { %v318_v50 = vmax.f32 %v286_v38, 0.0  ;;  %v303_v51 = vadd.f32 %v625_v9, %v264_v41  ;;  %v287_v52 = vadd.f32 %v625_v9, %v248_v42  ;;  %v249_v53 = vmul.f32 %v493_v43, %v616_v0 }
  0x1c   : > { %v266_v54 = vmul.f32 %v528_v48, %v616_v0  ;;  %v250_v55 = vmul.f32 %v496_v49, %v616_v0  ;;  %v529_v56 = vunpack.c.h.bf16 %v556_v44  ;;  %v497_v57 = vunpack.c.h.bf16 %v548_v45 }
  0x1d   : > { %380 = vxpose.xlu1.b32.cont [2/16] (narrow) %v332_v32, 8  ;;  %v335_v58 = vmax.f32 %v303_v51, 0.0  ;;  %v319_v59 = vmax.f32 %v287_v52, 0.0  ;;  %v304_v60 = vadd.f32 %v625_v9, %v265_v47  ;;  %v288_v61 = vadd.f32 %v625_v9, %v249_v53 }
  0x1e   : > { %348 = vxpose.xlu0.b32.cont [2/16] (narrow) %v316_v33, 8  ;;  %v305_v1 = vadd.f32 %v625_v9, %v266_v54  ;;  %v267_v2 = vmul.f32 %v529_v56, %v616_v0  ;;  %v251_v3 = vmul.f32 %v497_v57, %v616_v0  ;;  %v532_v4 = vunpack.c.l.bf16 %v557_v62  ;;  %v560_v54 = vld [vmem:[%s611_s18 + $0x78] sm:$0xff]  }
  0x1f   : > { %v336_v5 = vmax.f32 %v304_v60, 0.0  ;;  %v320_v6 = vmax.f32 %v288_v61, 0.0  ;;  %v289_v7 = vadd.f32 %v625_v9, %v250_v55  ;;  %v500_v8 = vunpack.c.l.bf16 %v549_v63  ;;  %v552_v55 = vld [vmem:[%s611_s18 + $0x38] sm:$0xff]  }
  0x20   : > { %v337_v10 = vmax.f32 %v305_v1, 0.0  ;;  %v306_v11 = vadd.f32 %v625_v9, %v267_v2  ;;  %v290_v12 = vadd.f32 %v625_v9, %v251_v3  ;;  %v268_v13 = vmul.f32 %v532_v4, %v616_v0 }
  0x21   : > { %381 = vxpose.xlu1.b32.cont [3/16] (narrow) %v333_v36, 8  ;;  %v321_v14 = vmax.f32 %v289_v7, 0.0  ;;  %v252_v15 = vmul.f32 %v500_v8, %v616_v0  ;;  %v533_v16 = vunpack.c.h.bf16 %v557_v62  ;;  %v501_v17 = vunpack.c.h.bf16 %v549_v63  ;;  %v559_v36 = vld [vmem:[%s611_s18 + $0x70] sm:$0xff]  }
  0x22   : > { %349 = vxpose.xlu0.b32.cont [3/16] (narrow) %v317_v40, 8  ;;  %v338_v20 = vmax.f32 %v306_v11, 0.0  ;;  %v307_v21 = vadd.f32 %v625_v9, %v268_v13  ;;  %v536_v22 = vunpack.c.l.bf16 %v558_v18  ;;  %v504_v23 = vunpack.c.l.bf16 %v550_v19 }
  0x23   : > { %v322_v24 = vmax.f32 %v290_v12, 0.0  ;;  %v291_v25 = vadd.f32 %v625_v9, %v252_v15  ;;  %v269_v26 = vmul.f32 %v533_v16, %v616_v0  ;;  %v253_v27 = vmul.f32 %v501_v17, %v616_v0 }
  0x24   : > { %v270_v28 = vmul.f32 %v536_v22, %v616_v0  ;;  %v254_v29 = vmul.f32 %v504_v23, %v616_v0  ;;  %v537_v30 = vunpack.c.h.bf16 %v558_v18  ;;  %v505_v31 = vunpack.c.h.bf16 %v550_v19 }
  0x25   : > { %382 = vxpose.xlu1.b32.cont [4/16] (narrow) %v334_v46, 8  ;;  %v339_v32 = vmax.f32 %v307_v21, 0.0  ;;  %v323_v33 = vmax.f32 %v291_v25, 0.0  ;;  %v308_v34 = vadd.f32 %v625_v9, %v269_v26  ;;  %v292_v35 = vadd.f32 %v625_v9, %v253_v27 }
  0x26   : > { %350 = vxpose.xlu0.b32.cont [4/16] (narrow) %v318_v50, 8  ;;  %v309_v38 = vadd.f32 %v625_v9, %v270_v28  ;;  %v271_v39 = vmul.f32 %v537_v30, %v616_v0  ;;  %v255_v40 = vmul.f32 %v505_v31, %v616_v0  ;;  %v540_v41 = vunpack.c.l.bf16 %v559_v36 }
  0x27   : > { %v340_v42 = vmax.f32 %v308_v34, 0.0  ;;  %v324_v43 = vmax.f32 %v292_v35, 0.0  ;;  %v293_v44 = vadd.f32 %v625_v9, %v254_v29  ;;  %v508_v45 = vunpack.c.l.bf16 %v551_v37 }
  0x28   : > { %v341_v46 = vmax.f32 %v309_v38, 0.0  ;;  %v310_v47 = vadd.f32 %v625_v9, %v271_v39  ;;  %v294_v48 = vadd.f32 %v625_v9, %v255_v40  ;;  %v272_v49 = vmul.f32 %v540_v41, %v616_v0 }
  0x29   : > { %383 = vxpose.xlu1.b32.cont [5/16] (narrow) %v335_v58, 8  ;;  %v325_v50 = vmax.f32 %v293_v44, 0.0  ;;  %v256_v51 = vmul.f32 %v508_v45, %v616_v0  ;;  %v541_v52 = vunpack.c.h.bf16 %v559_v36  ;;  %v509_v53 = vunpack.c.h.bf16 %v551_v37 }
  0x2a   : > { %351 = vxpose.xlu0.b32.cont [5/16] (narrow) %v319_v59, 8  ;;  %v342_v56 = vmax.f32 %v310_v47, 0.0  ;;  %v311_v57 = vadd.f32 %v625_v9, %v272_v49  ;;  %v544_v58 = vunpack.c.l.bf16 %v560_v54  ;;  %v512_v59 = vunpack.c.l.bf16 %v552_v55 }
  0x2b   : > { %v326_v60 = vmax.f32 %v294_v48, 0.0  ;;  %v295_v61 = vadd.f32 %v625_v9, %v256_v51  ;;  %v273_v62 = vmul.f32 %v541_v52, %v616_v0  ;;  %v257_v63 = vmul.f32 %v509_v53, %v616_v0 }
  0x2c   : > { %v274_v1 = vmul.f32 %v544_v58, %v616_v0  ;;  %v258_v2 = vmul.f32 %v512_v59, %v616_v0  ;;  %v545_v3 = vunpack.c.h.bf16 %v560_v54  ;;  %v513_v4 = vunpack.c.h.bf16 %v552_v55 }
  0x2d   : > { %384 = vxpose.xlu1.b32.cont [6/16] (narrow) %v336_v5, 8  ;;  %v343_v5 = vmax.f32 %v311_v57, 0.0  ;;  %v312_v7 = vadd.f32 %v625_v9, %v273_v62  ;;  %v296_v8 = vadd.f32 %v625_v9, %v257_v63 }
  0x2e   : > { %352 = vxpose.xlu0.b32.cont [6/16] (narrow) %v320_v6, 8  ;;  %v327_v6 = vmax.f32 %v295_v61, 0.0  ;;  %v259_v11 = vmul.f32 %v513_v4, %v616_v0  ;;  %v297_v15 = vadd.f32 %v625_v9, %v258_v2 }
  0x2f   : > { %v344_v12 = vmax.f32 %v312_v7, 0.0  ;;  %v328_v13 = vmax.f32 %v296_v8, 0.0 }
  0x30   : > { %v329_v17 = vmax.f32 %v297_v15, 0.0  ;;  %v298_v19 = vadd.f32 %v625_v9, %v259_v11 }
  0x31   : > { %385 = vxpose.xlu1.b32.cont [7/16] (narrow) %v337_v10, 8  ;;  %v275_v10 = vmul.f32 %v545_v3, %v616_v0 }
  0x32   : > { %353 = vxpose.xlu0.b32.cont [7/16] (narrow) %v321_v14, 8  ;;  %v313_v14 = vadd.f32 %v625_v9, %v274_v1 }
  0x33   : > { %v314_v18 = vadd.f32 %v625_v9, %v275_v10 }
  0x34   : > { %v345_v16 = vmax.f32 %v313_v14, 0.0 }
  0x35   : > { %386 = vxpose.xlu1.b32.cont [8/16] (narrow) %v338_v20, 8  ;;  %v346_v0 = vmax.f32 %v314_v18, 0.0  ;;  %v330_v20 = vmax.f32 %v298_v19, 0.0 }
  0x36   : > { %354 = vxpose.xlu0.b32.cont [8/16] (narrow) %v322_v24, 8 }
  0x39   : > { %387 = vxpose.xlu1.b32.cont [9/16] (narrow) %v339_v32, 8 }
  0x3a   : > { %355 = vxpose.xlu0.b32.cont [9/16] (narrow) %v323_v33, 8 }
  0x3d   : > { %388 = vxpose.xlu1.b32.cont [10/16] (narrow) %v340_v42, 8 }
  0x3e   : > { %356 = vxpose.xlu0.b32.cont [10/16] (narrow) %v324_v43, 8 }
  0x41   : > { %389 = vxpose.xlu1.b32.cont [11/16] (narrow) %v341_v46, 8 }
  0x42   : > { %357 = vxpose.xlu0.b32.cont [11/16] (narrow) %v325_v50, 8 }
  0x45   : > { %390 = vxpose.xlu1.b32.cont [12/16] (narrow) %v342_v56, 8 }
  0x46   : > { %358 = vxpose.xlu0.b32.cont [12/16] (narrow) %v326_v60, 8 }
  0x49   : > { %391 = vxpose.xlu1.b32.cont [13/16] (narrow) %v343_v5, 8 }
  0x4a   : > { %359 = vxpose.xlu0.b32.cont [13/16] (narrow) %v327_v6, 8 }
  0x4d   : > { %392 = vxpose.xlu1.b32.cont [14/16] (narrow) %v344_v12, 8 }
  0x4e   : > { %360 = vxpose.xlu0.b32.cont [14/16] (narrow) %v328_v13, 8 }
  0x51   : > { %393 = vxpose.xlu1.b32.cont [15/16] (narrow) %v345_v16, 8 }
  0x52   : > { %361 = vxpose.xlu0.b32.cont [15/16] (narrow) %v329_v17, 8 }
  0x55   : > { %394 = vxpose.xlu1.b32.end [16/16] (narrow) %v346_v0, 8 }
  0x56   : > { %362 = vxpose.xlu0.b32.end [16/16] (narrow) %v330_v20, 8 }
  0x99   : > { %v395_v21 = vpop.trf.xlu1 }
  0x9a   : > { %v363_v22 = vpop.trf.xlu0  ;;  %412 = vst [vmem:[%s172_s26 + $0x8] sm:$0xff] %v395_v21 }
  0x9b   : > { %411 = vst [vmem:[%s172_s26] sm:$0xff] %v363_v22 }
  0x9c PF: > { %s13_s12 = sadd.s32 1, %s575_s12  }
  0x9d   : > { %p10_p5 = scmp.ge.s32.totalorder %s13_s12, 4  }
  0x9f   :  { %12 = sbr.rel (!%p10_p5) target bundleno = 1 (0x1), region = 62 }

// kernel: conv_block_forward.2
= control target key start
LH: loop header
LB: loop body
LE: loop exit
PB: predicated region body
PF: predicated region fallthrough
CT: control target
= control target key end

     0   :  { %s2490_s15 = smov 0   ;;  %s3028_s0 = inlined_call_operand.vmem [shape: f32[2,18,18,4], index: 0, kind: input, shape index: {}]   ;;  %s3029_s1 = inlined_call_operand.vmem [shape: bf16[128,128], index: 1, kind: input, shape index: {}]   ;;  %s3030_s2 = inlined_call_operand.vmem [shape: bf16[512,128], index: 2, kind: output, shape index: {0}]   ;;  %s3031_s3 = inlined_call_operand.vmem [shape: f32[2,8,128], index: 3, kind: output, shape index: {1}]   ;;  %s3032_s4 = inlined_call_operand.vmem [shape: f32[2,8,128], index: 4, kind: output, shape index: {2}]  }
   0x1 LB: > { %s2496_s16 = sadd.s32 4294967295, %s2454_s15   ;;  %p1967_p0 = scmp.ge.s32.totalorder %s2454_s15, 1  ;;  %s2454_s15 = sphi %s2490_s15, %s15_s15  }
   0x2   : > { %p167_p1 = scmp.lt.s32.totalorder %s2454_s15, 3 }
   0x4   : > { %p168_p2 = pnand %p1967_p0, %p167_p1 }
   0x5   : > { %p201_p3 = scmp.lt.s32.totalorder (!%p168_p2), %s2496_s16, 1  ;;  %v2456_v0 = vmov (!%p168_p2), 0   ;;  %v2440_v1 = vld [vmem:[%s3029_s1] sm:$0xff] (!%p168_p2)   ;;  %s2457_s24 = smov (!%p168_p2), 4   ;;  %vm285_vm0 = vcmask (!%p168_p2), 31744   ;;  %v2441_v50 = vld [vmem:[%s3029_s1 + $0x8] sm:$0xff] (!%p168_p2)  }
   0x6   : > { %171 = sbr.rel (%p168_p2) target bundleno = 633 (0x279), region = 28  ;;  %221 = vst [vmem:[#allocation2] sm:$0xff] (!%p168_p2), %v2456_v0  ;;  %222 = vst [vmem:[#allocation2 + $0x8] sm:$0xff] (!%p168_p2), %v2456_v0  ;;  %2358 = vmatprep.subr.bf16.mxu0 (!%p168_p2), %v2440_v1  ;;  %2406 = vmatprep.subr.bf16.mxu1 (!%p168_p2), %v2440_v1  ;;  %s2458_s25 = smov (!%p168_p2), 8   ;;  %v2442_v52 = vld [vmem:[%s3029_s1 + $0x10] sm:$0xff] (!%p168_p2)   ;;  %v2443_v57 = vld [vmem:[%s3029_s1 + $0x18] sm:$0xff] (!%p168_p2)  }
   0x7   : > { %223 = vst [vmem:[#allocation2 + $0x10] sm:$0xff] (!%p168_p2), %v2456_v0  ;;  %224 = vst [vmem:[#allocation2 + $0x18] sm:$0xff] (!%p168_p2), %v2456_v0  ;;  %2359 = vmatpush3.bf16.msra.mxu0 (!%p168_p2), %v2440_v1  ;;  %2414 = vmatpush3.bf16.msra.mxu1 (!%p168_p2), %v2440_v1  ;;  %s2459_s26 = smov (!%p168_p2), 12   ;;  %s2460_s27 = smov (!%p168_p2), 16   ;;  %v2444_v62 = vld [vmem:[%s3029_s1 + $0x20] sm:$0xff] (!%p168_p2)   ;;  %vm414_vm1 = vcmask (!%p168_p2), 64544  }
   0x8   : > { %225 = vst [vmem:[#allocation2 + $0x20] sm:$0xff] (!%p168_p2), %v2456_v0  ;;  %226 = vst [vmem:[#allocation2 + $0x28] sm:$0xff] (!%p168_p2), %v2456_v0  ;;  %s2461_s28 = smov (!%p168_p2), 20   ;;  %2360 = vmatprep.subr.bf16.mxu0 (!%p168_p2), %v2441_v50  ;;  %2407 = vmatprep.subr.bf16.mxu1 (!%p168_p2), %v2441_v50  ;;  %s2462_s7 = smov (!%p168_p2), 24   ;;  %vm543_vm2 = vcmask (!%p168_p2), 97344   ;;  %vm673_vm3 = vcmask (!%p168_p2), 130144  }
   0x9   : > { %227 = vst [vmem:[#allocation2 + $0x30] sm:$0xff] (!%p168_p2), %v2456_v0  ;;  %228 = vst [vmem:[#allocation2 + $0x38] sm:$0xff] (!%p168_p2), %v2456_v0  ;;  %s2463_s10 = smov (!%p168_p2), 28   ;;  %s2464_s13 = smov (!%p168_p2), 32   ;;  %vm802_vm4 = vcmask (!%p168_p2), 162944   ;;  %vm931_vm5 = vcmask (!%p168_p2), 195744  }
   0xa   : > { %229 = vst [vmem:[#allocation2 + $0x40] sm:$0xff] (!%p168_p2), %v2456_v0  ;;  %230 = vst [vmem:[#allocation2 + $0x48] sm:$0xff] (!%p168_p2), %v2456_v0  ;;  %vm1061_vm6 = vcmask (!%p168_p2), 228544   ;;  %vm1190_vm7 = vcmask (!%p168_p2), 261344   ;;  %vm1319_vm8 = vcmask (!%p168_p2), 294144  }
   0xb   : > { %231 = vst [vmem:[#allocation2 + $0x50] sm:$0xff] (!%p168_p2), %v2456_v0  ;;  %232 = vst [vmem:[#allocation2 + $0x58] sm:$0xff] (!%p168_p2), %v2456_v0  ;;  %2361 = vmatpush3.bf16.msra.mxu0 (!%p168_p2), %v2441_v50  ;;  %2415 = vmatpush3.bf16.msra.mxu1 (!%p168_p2), %v2441_v50 }
   0xc   : > { %233 = vst [vmem:[#allocation2 + $0x60] sm:$0xff] (!%p168_p2), %v2456_v0  ;;  %234 = vst [vmem:[#allocation2 + $0x68] sm:$0xff] (!%p168_p2), %v2456_v0  ;;  %2362 = vmatprep.subr.bf16.mxu0 (!%p168_p2), %v2442_v52  ;;  %2408 = vmatprep.subr.bf16.mxu1 (!%p168_p2), %v2442_v52 }
   0xd   : > { %235 = vst [vmem:[#allocation2 + $0x70] sm:$0xff] %v2456_v0  ;;  %236 = vst [vmem:[#allocation2 + $0x78] sm:$0xff] %v2456_v0  ;;  %s2504_s17 = scalar_select %p201_p3, %s2496_s16, 1 }
   0xf   : > { %s2422_s20 = smul.u32 432, %s2504_s17  ;;  %2363 = vmatpush3.bf16.msra.mxu0 %v2442_v52  ;;  %2416 = vmatpush3.bf16.msra.mxu1 %v2442_v52 }
  0x10   : > { %2364 = vmatprep.subr.bf16.mxu0 %v2443_v57  ;;  %2409 = vmatprep.subr.bf16.mxu1 %v2443_v57 }
  0x11   : > { %s2513_s23 = scalar_lea.vmem %s3028_s0, %s2422_s20 }
  0x12   : > { %v302_v2 = vld [vmem:[%s2513_s23 + $0x1] sm:$0xff]  ;;  %v303_v3 = vld [vmem:[%s2513_s23 + $0x9] sm:$0xff]  ;;  %v304_v7 = vld [vmem:[%s2513_s23 + $0x19] sm:$0xff] }
  0x13   : > { %v431_v4 = vld [vmem:[%s2513_s23 + $0x2] sm:$0xff]  ;;  %v334_v5 = vpack.c.bf16 %v303_v3, %v302_v2  ;;  %v432_v6 = vld [vmem:[%s2513_s23 + $0xa] sm:$0xff]  ;;  %v433_v10 = vld [vmem:[%s2513_s23 + $0x1a] sm:$0xff]  ;;  %2365 = vmatpush3.bf16.msra.mxu0 %v2443_v57  ;;  %2417 = vmatpush3.bf16.msra.mxu1 %v2443_v57 }
  0x14   : > { %v305_v8 = vld [vmem:[%s2513_s23 + $0x21] sm:$0xff]  ;;  %v463_v9 = vpack.c.bf16 %v432_v6, %v431_v4  ;;  %v1973_v12 = vld [vmem:[%s2513_s23 + $0x18] sm:$0xff]  ;;  %v1975_v15 = vld [vmem:[%s2513_s23 + $0x30] sm:$0xff]  ;;  %2366 = vmatprep.subr.bf16.mxu0 %v2444_v62  ;;  %2410 = vmatprep.subr.bf16.mxu1 %v2444_v62 }
  0x15   : > { %v434_v11 = vld [vmem:[%s2513_s23 + $0x22] sm:$0xff]  ;;  %366 = vrot.lane.b32.xlu0 %v334_v5, %s2457_s24  ;;  %v335_v13 = vpack.c.bf16 %v305_v8, %v304_v7  ;;  %v1976_v16 = vld [vmem:[%s2513_s23 + $0x38] sm:$0xff]  ;;  %v2072_v21 = vld [vmem:[%s2513_s23 + $0x50] sm:$0xff] }
  0x16   : > { %v1974_v14 = vld [vmem:[%s2513_s23 + $0x20] sm:$0xff]  ;;  %495 = vrot.lane.b32.xlu1 %v463_v9, %s2458_s25  ;;  %v464_v17 = vpack.c.bf16 %v434_v11, %v433_v10  ;;  %v2529_v19 = vpack.c.bf16 %v1976_v16, %v1975_v15  ;;  %v2071_v20 = vld [vmem:[%s2513_s23 + $0x48] sm:$0xff]  ;;  %v2007_v25 = vld [vmem:[%s2513_s23 + $0x31] sm:$0xff] }
  0x17   : > { %v593_v18 = vpack.c.bf16 %v1974_v14, %v1973_v12  ;;  %v2533_v22 = vpack.c.bf16 %v2072_v21, %v2071_v20  ;;  %v1979_v23 = vld [vmem:[%s2513_s23 + $0x60] sm:$0xff]  ;;  %v1980_v24 = vld [vmem:[%s2513_s23 + $0x68] sm:$0xff]  ;;  %v2075_v28 = vld [vmem:[%s2513_s23 + $0x78] sm:$0xff]  ;;  %2367 = vmatpush3.bf16.msra.mxu0 %v2444_v62  ;;  %2418 = vmatpush3.bf16.msra.mxu1 %v2444_v62 }
  0x18   : > { %288 = vst.msk [vmem:[#allocation2 + $0x10] sm:$0xff] %vm285_vm0, %v2529_v19  ;;  %v2543_v26 = vpack.c.bf16 %v1980_v24, %v1979_v23  ;;  %v2008_v27 = vld [vmem:[%s2513_s23 + $0x39] sm:$0xff]  ;;  %v1983_v31 = vld [vmem:[%s2513_s23 + $0x90] sm:$0xff]  ;;  %v2079_v37 = vld [vmem:[%s2513_s23 + $0xa8] sm:$0xff] }
  0x19   : > { %287 = vst.msk [vmem:[#allocation2 + $0x8] sm:$0xff] %vm285_vm0, %v593_v18  ;;  %368 = vrot.lane.b32.xlu0 %v335_v13, %s2457_s24  ;;  %289 = vst.msk [vmem:[#allocation2 + $0x18] sm:$0xff] %vm285_vm0, %v2533_v22  ;;  %v2076_v29 = vld [vmem:[%s2513_s23 + $0x80] sm:$0xff]  ;;  %v1984_v32 = vld [vmem:[%s2513_s23 + $0x98] sm:$0xff]  ;;  %v2559_v33 = vpack.c.bf16 %v2008_v27, %v2007_v25 }
  0x1a   : > { %497 = vrot.lane.b32.xlu1 %v464_v17, %s2458_s25  ;;  %v2550_v30 = vpack.c.bf16 %v2076_v29, %v2075_v28  ;;  %290 = vst.msk [vmem:[#allocation2 + $0x20] sm:$0xff] %vm285_vm0, %v2543_v26  ;;  %v2039_v34 = vld [vmem:[%s2513_s23 + $0x32] sm:$0xff]  ;;  %v2562_v35 = vpack.c.bf16 %v1984_v32, %v1983_v31  ;;  %v2040_v36 = vld [vmem:[%s2513_s23 + $0x3a] sm:$0xff]  ;;  %v1988_v41 = vld [vmem:[%s2513_s23 + $0xc8] sm:$0xff] }
  0x1b   : > { %v2080_v38 = vld [vmem:[%s2513_s23 + $0xb0] sm:$0xff]  ;;  %v1987_v40 = vld [vmem:[%s2513_s23 + $0xc0] sm:$0xff]  ;;  %v2578_v42 = vpack.c.bf16 %v2040_v36, %v2039_v34  ;;  %v238_v45 = vld [vmem:[%s2513_s23 + $0x8] sm:$0xff] }
  0x1c   : > { %291 = vst.msk [vmem:[#allocation2 + $0x28] sm:$0xff] %vm285_vm0, %v2550_v30  ;;  %v2569_v39 = vpack.c.bf16 %v2080_v38, %v2079_v37  ;;  %292 = vst.msk [vmem:[#allocation2 + $0x30] sm:$0xff] %vm285_vm0, %v2562_v35  ;;  %v2580_v43 = vpack.c.bf16 %v1988_v41, %v1987_v40  ;;  %v237_v44 = vld [vmem:[%s2513_s23] sm:$0xff]  ;;  %v2083_v47 = vld [vmem:[%s2513_s23 + $0xd8] sm:$0xff] }
  0x1d   : > { %625 = vrot.lane.b32.xlu0 %v593_v18, %s2459_s26  ;;  %v269_v46 = vpack.c.bf16 %v238_v45, %v237_v44  ;;  %v2084_v48 = vld [vmem:[%s2513_s23 + $0xe0] sm:$0xff]  ;;  %v2103_v51 = vld [vmem:[%s2513_s23 + $0x49] sm:$0xff]  ;;  %v2104_v53 = vld [vmem:[%s2513_s23 + $0x51] sm:$0xff] }
  0x1e   : > { %627 = vrot.lane.b32.xlu1 %v2529_v19, %s2459_s26  ;;  %293 = vst.msk [vmem:[#allocation2 + $0x38] sm:$0xff] %vm285_vm0, %v2569_v39  ;;  %294 = vst.msk [vmem:[#allocation2 + $0x40] sm:$0xff] %vm285_vm0, %v2580_v43  ;;  %v2591_v49 = vpack.c.bf16 %v2084_v48, %v2083_v47  ;;  %v1991_v54 = vld [vmem:[%s2513_s23 + $0xf0] sm:$0xff]  ;;  %v1992_v55 = vld [vmem:[%s2513_s23 + $0xf8] sm:$0xff]  ;;  %v1111_v58 = vpack.c.bf16 %v2104_v53, %v2103_v51 }
  0x1f   : > { %286 = vst.msk [vmem:[#allocation2] sm:$0xff] %vm285_vm0, %v269_v46  ;;  %v2608_v56 = vpack.c.bf16 %v1992_v55, %v1991_v54  ;;  %v2087_v59 = vld [vmem:[%s2513_s23 + $0x108] sm:$0xff]  ;;  %v2088_v60 = vld [vmem:[%s2513_s23 + $0x110] sm:$0xff]  ;;  %v2447_v4 = vld [vmem:[%s3029_s1 + $0x38] sm:$0xff]  }
  0x20   : > { %295 = vst.msk [vmem:[#allocation2 + $0x48] sm:$0xff] %vm285_vm0, %v2591_v49  ;;  %v2621_v61 = vpack.c.bf16 %v2088_v60, %v2087_v59  ;;  %v2135_v63 = vld [vmem:[%s2513_s23 + $0x4a] sm:$0xff]  ;;  %v2136_v0 = vld [vmem:[%s2513_s23 + $0x52] sm:$0xff]  ;;  %v2011_v5 = vld [vmem:[%s2513_s23 + $0x61] sm:$0xff] }
  0x21   : > { %754 = vrot.lane.b32.xlu0 %v335_v13, %s2460_s27  ;;  %296 = vst.msk [vmem:[#allocation2 + $0x50] sm:$0xff] %vm285_vm0, %v2608_v56  ;;  %v1240_v1 = vpack.c.bf16 %v2136_v0, %v2135_v63  ;;  %v2445_v2 = vld [vmem:[%s3029_s1 + $0x28] sm:$0xff]   ;;  %v2446_v3 = vld [vmem:[%s3029_s1 + $0x30] sm:$0xff]   ;;  %v1995_v7 = vld [vmem:[%s2513_s23 + $0x120] sm:$0xff] }
  0x22   : > { %756 = vrot.lane.b32.xlu1 %v2559_v33, %s2460_s27  ;;  %297 = vst.msk [vmem:[#allocation2 + $0x58] sm:$0xff] %vm285_vm0, %v2621_v61  ;;  %2368 = vmatprep.subr.bf16.mxu0 %v2445_v2  ;;  %v2012_v6 = vld [vmem:[%s2513_s23 + $0x69] sm:$0xff]  ;;  %v2107_v14 = vld [vmem:[%s2513_s23 + $0x79] sm:$0xff]  ;;  %v2108_v15 = vld [vmem:[%s2513_s23 + $0x81] sm:$0xff] }
  0x23   : > { %2411 = vmatprep.subr.bf16.mxu1 %v2445_v2  ;;  %2369 = vmatpush3.bf16.msra.mxu0 %v2445_v2  ;;  %v1996_v8 = vld [vmem:[%s2513_s23 + $0x128] sm:$0xff]  ;;  %v725_v10 = vpack.c.bf16 %v2012_v6, %v2011_v5  ;;  %v2091_v16 = vld [vmem:[%s2513_s23 + $0x138] sm:$0xff]  ;;  %v1999_v25 = vld [vmem:[%s2513_s23 + $0x150] sm:$0xff] }
  0x24   : > { %2419 = vmatpush3.bf16.msra.mxu1 %v2445_v2  ;;  %2370 = vmatprep.subr.bf16.mxu0 %v2446_v3  ;;  %v2655_v9 = vpack.c.bf16 %v1996_v8, %v1995_v7  ;;  %v2043_v11 = vld [vmem:[%s2513_s23 + $0x62] sm:$0xff]  ;;  %v2044_v12 = vld [vmem:[%s2513_s23 + $0x6a] sm:$0xff]  ;;  %v2139_v20 = vld [vmem:[%s2513_s23 + $0x7a] sm:$0xff] }
  0x25   : > { %883 = vrot.lane.b32.xlu0 %v464_v17, %s2461_s28  ;;  %2412 = vmatprep.subr.bf16.mxu1 %v2446_v3  ;;  %v854_v13 = vpack.c.bf16 %v2044_v12, %v2043_v11  ;;  %v2092_v17 = vld [vmem:[%s2513_s23 + $0x140] sm:$0xff]  ;;  %v2015_v23 = vld [vmem:[%s2513_s23 + $0x91] sm:$0xff]  ;;  %v2095_v34 = vld [vmem:[%s2513_s23 + $0x168] sm:$0xff] }
  0x26   : > { %885 = vrot.lane.b32.xlu1 %v2578_v42, %s2461_s28  ;;  %298 = vst.msk [vmem:[#allocation2 + $0x60] sm:$0xff] %vm285_vm0, %v2655_v9  ;;  %v2673_v18 = vpack.c.bf16 %v2092_v17, %v2091_v16  ;;  %v2140_v21 = vld [vmem:[%s2513_s23 + $0x82] sm:$0xff]  ;;  %v2016_v24 = vld [vmem:[%s2513_s23 + $0x99] sm:$0xff]  ;;  %v2096_v36 = vld [vmem:[%s2513_s23 + $0x170] sm:$0xff] }
  0x27   : > { %2371 = vmatpush3.bf16.msra.mxu0 %v2446_v3  ;;  %v727_v28 = vpack.c.bf16 %v2016_v24, %v2015_v23  ;;  %v2047_v29 = vld [vmem:[%s2513_s23 + $0x92] sm:$0xff]  ;;  %v2048_v31 = vld [vmem:[%s2513_s23 + $0x9a] sm:$0xff]  ;;  %v2713_v37 = vpack.c.bf16 %v2096_v36, %v2095_v34  ;;  %v2143_v40 = vld [vmem:[%s2513_s23 + $0xaa] sm:$0xff] }
  0x28   : > { %2420 = vmatpush3.bf16.msra.mxu1 %v2446_v3  ;;  %2372 = vmatprep.subr.bf16.mxu0 %v2447_v4  ;;  %299 = vst.msk [vmem:[#allocation2 + $0x68] sm:$0xff] %vm285_vm0, %v2673_v18  ;;  %v856_v32 = vpack.c.bf16 %v2048_v31, %v2047_v29  ;;  %v2144_v41 = vld [vmem:[%s2513_s23 + $0xb2] sm:$0xff]  ;;  %v2020_v44 = vld [vmem:[%s2513_s23 + $0xc9] sm:$0xff]  ;;  %v2116_v51 = vld [vmem:[%s2513_s23 + $0xe1] sm:$0xff] }
  0x29   : > { %1013 = vrot.lane.b32.xlu0 %v2529_v19, %s2462_s7  ;;  %2413 = vmatprep.subr.bf16.mxu1 %v2447_v4  ;;  %v1113_v19 = vpack.c.bf16 %v2108_v15, %v2107_v14  ;;  %301 = vst.msk [vmem:[#allocation2 + $0x78] sm:$0xff] %vm285_vm0, %v2713_v37  ;;  %v2051_v46 = vld [vmem:[%s2513_s23 + $0xc2] sm:$0xff]  ;;  %v2052_v47 = vld [vmem:[%s2513_s23 + $0xca] sm:$0xff]  ;;  %v2147_v57 = vld [vmem:[%s2513_s23 + $0xda] sm:$0xff] }
  0x2a   : > { %1015 = vrot.lane.b32.xlu1 %v2533_v22, %s2462_s7  ;;  %v858_v48 = vpack.c.bf16 %v2052_v47, %v2051_v46  ;;  %v2023_v3 = vld [vmem:[%s2513_s23 + $0xf1] sm:$0xff]  ;;  %v2119_v15 = vld [vmem:[%s2513_s23 + $0x109] sm:$0xff]  ;;  %v2027_v34 = vld [vmem:[%s2513_s23 + $0x121] sm:$0xff] }
  0x2b   : > { %2373 = vmatpush3.bf16.msra.mxu0 %v2447_v4  ;;  %v2055_v8 = vld [vmem:[%s2513_s23 + $0xf2] sm:$0xff]  ;;  %v2151_v23 = vld [vmem:[%s2513_s23 + $0x10a] sm:$0xff] }
  0x2c   : > { %2421 = vmatpush3.bf16.msra.mxu1 %v2447_v4  ;;  %v2024_v4 = vld [vmem:[%s2513_s23 + $0xf9] sm:$0xff]  ;;  %v2120_v16 = vld [vmem:[%s2513_s23 + $0x111] sm:$0xff]  ;;  %v2028_v36 = vld [vmem:[%s2513_s23 + $0x129] sm:$0xff] }
  0x2d   : > { %1142 = vrot.lane.b32.xlu0 %v2559_v33, %s2463_s10  ;;  %v731_v6 = vpack.c.bf16 %v2024_v4, %v2023_v3  ;;  %v2152_v24 = vld [vmem:[%s2513_s23 + $0x112] sm:$0xff] }
  0x2e   : > { %1144 = vrot.lane.b32.xlu1 %v1111_v58, %s2463_s10  ;;  %v2032_v3 = vld [vmem:[%s2513_s23 + $0x159] sm:$0xff] }
  0x31   : > { %1271 = vrot.lane.b32.xlu0 %v2578_v42, %s2464_s13 }
  0x32   : > { %370 = vrot.lane.b32.xlu1 %v2559_v33, %s2457_s24  ;;  %v2112_v33 = vld [vmem:[%s2513_s23 + $0xb1] sm:$0xff] }
  0x35   : > { %1273 = vrot.lane.b32.xlu0 %v1240_v1, %s2464_s13 }
  0x36   : > { %372 = vrot.lane.b32.xlu1 %v1111_v58, %s2457_s24 }
  0x39   : > { %499 = vrot.lane.b32.xlu0 %v2578_v42, %s2458_s25  ;;  %v1244_v42 = vpack.c.bf16 %v2144_v41, %v2143_v40  ;;  %v733_v40 = vpack.c.bf16 %v2028_v36, %v2027_v34  ;;  %v2035_v34 = vld [vmem:[%s2513_s23 + $0x181] sm:$0xff]  ;;  %v2036_v36 = vld [vmem:[%s2513_s23 + $0x189] sm:$0xff] }
  0x3a   : > { %501 = vrot.lane.b32.xlu1 %v1240_v1, %s2458_s25 }
  0x3d   : > { %629 = vrot.lane.b32.xlu0 %v2533_v22, %s2459_s26  ;;  %v1242_v22 = vpack.c.bf16 %v2140_v21, %v2139_v20 }
  0x3e   : > { %631 = vrot.lane.b32.xlu1 %v2543_v26, %s2459_s26 }
  0x41   : > { %758 = vrot.lane.b32.xlu0 %v1111_v58, %s2460_s27  ;;  %v2148_v58 = vld [vmem:[%s2513_s23 + $0xe2] sm:$0xff] }
  0x42   : > { %760 = vrot.lane.b32.xlu1 %v725_v10, %s2460_s27  ;;  %v1246_v60 = vpack.c.bf16 %v2148_v58, %v2147_v57  ;;  %v2156_v57 = vld [vmem:[%s2513_s23 + $0x142] sm:$0xff] }
  0x45   : > { %887 = vrot.lane.b32.xlu0 %v1240_v1, %s2461_s28 }
  0x46   : > { %889 = vrot.lane.b32.xlu1 %v854_v13, %s2461_s28 }
  0x49   : > { %1017 = vrot.lane.b32.xlu0 %v2543_v26, %s2462_s7  ;;  %v2000_v26 = vld [vmem:[%s2513_s23 + $0x158] sm:$0xff] }
  0x4a   : > { %1019 = vrot.lane.b32.xlu1 %v2550_v30, %s2462_s7  ;;  %v2695_v27 = vpack.c.bf16 %v2000_v26, %v1999_v25 }
  0x4c   : > { %300 = vst.msk [vmem:[#allocation2 + $0x70] sm:$0xff] %vm285_vm0, %v2695_v27 }
  0x4d   : > { %1146 = vrot.lane.b32.xlu0 %v725_v10, %s2463_s10 }
  0x4e   : > { %1148 = vrot.lane.b32.xlu1 %v1113_v19, %s2463_s10 }
  0x51   : > { %1275 = vrot.lane.b32.xlu0 %v854_v13, %s2464_s13 }
  0x52   : > { %374 = vrot.lane.b32.xlu1 %v725_v10, %s2457_s24  ;;  %v2056_v10 = vld [vmem:[%s2513_s23 + $0xfa] sm:$0xff] }
  0x55   : > { %1277 = vrot.lane.b32.xlu0 %v1242_v22, %s2464_s13 }
  0x56   : > { %376 = vrot.lane.b32.xlu1 %v1113_v19, %s2457_s24 }
  0x59   : > { %503 = vrot.lane.b32.xlu0 %v854_v13, %s2458_s25 }
  0x5a   : > { %505 = vrot.lane.b32.xlu1 %v1242_v22, %s2458_s25 }
  0x5d   : > { %633 = vrot.lane.b32.xlu0 %v2550_v30, %s2459_s26  ;;  %v2111_v30 = vld [vmem:[%s2513_s23 + $0xa9] sm:$0xff] }
  0x5e   : > { %635 = vrot.lane.b32.xlu1 %v2562_v35, %s2459_s26  ;;  %v1115_v38 = vpack.c.bf16 %v2112_v33, %v2111_v30 }
  0x61   : > { %762 = vrot.lane.b32.xlu0 %v1113_v19, %s2460_s27  ;;  %v1119_v19 = vpack.c.bf16 %v2120_v16, %v2119_v15 }
  0x62   : > { %764 = vrot.lane.b32.xlu1 %v727_v28, %s2460_s27 }
  0x65   : > { %891 = vrot.lane.b32.xlu0 %v1242_v22, %s2461_s28 }
  0x66   : > { %893 = vrot.lane.b32.xlu1 %v856_v32, %s2461_s28 }
  0x69   : > { %1021 = vrot.lane.b32.xlu0 %v2562_v35, %s2462_s7  ;;  %v2019_v35 = vld [vmem:[%s2513_s23 + $0xc1] sm:$0xff] }
  0x6a   : > { %1023 = vrot.lane.b32.xlu1 %v2569_v39, %s2462_s7  ;;  %v729_v45 = vpack.c.bf16 %v2020_v44, %v2019_v35  ;;  %v2060_v35 = vld [vmem:[%s2513_s23 + $0x12a] sm:$0xff] }
  0x6d   : > { %1150 = vrot.lane.b32.xlu0 %v727_v28, %s2463_s10 }
  0x6e   : > { %1152 = vrot.lane.b32.xlu1 %v1115_v38, %s2463_s10 }
  0x71   : > { %1279 = vrot.lane.b32.xlu0 %v856_v32, %s2464_s13 }
  0x72   : > { %378 = vrot.lane.b32.xlu1 %v727_v28, %s2457_s24  ;;  %v1248_v28 = vpack.c.bf16 %v2152_v24, %v2151_v23 }
  0x75   : > { %1281 = vrot.lane.b32.xlu0 %v1244_v42, %s2464_s13 }
  0x76   : > { %380 = vrot.lane.b32.xlu1 %v1115_v38, %s2457_s24 }
  0x79   : > { %507 = vrot.lane.b32.xlu0 %v856_v32, %s2458_s25 }
  0x7a   : > { %509 = vrot.lane.b32.xlu1 %v1244_v42, %s2458_s25 }
  0x7d   : > { %637 = vrot.lane.b32.xlu0 %v2569_v39, %s2459_s26  ;;  %v2115_v39 = vld [vmem:[%s2513_s23 + $0xd9] sm:$0xff] }
  0x7e   : > { %639 = vrot.lane.b32.xlu1 %v2580_v43, %s2459_s26  ;;  %v1117_v53 = vpack.c.bf16 %v2116_v51, %v2115_v39 }
  0x81   : > { %766 = vrot.lane.b32.xlu0 %v1115_v38, %s2460_s27 }
  0x82   : > { %768 = vrot.lane.b32.xlu1 %v729_v45, %s2460_s27 }
  0x85   : > { %895 = vrot.lane.b32.xlu0 %v1244_v42, %s2461_s28  ;;  %v2059_v42 = vld [vmem:[%s2513_s23 + $0x122] sm:$0xff] }
  0x86   : > { %897 = vrot.lane.b32.xlu1 %v858_v48, %s2461_s28 }
  0x87   : > { %v367_v50 = vpop.permute.xlu0 %366 }
  0x88   : > { %415 = vst.msk [vmem:[#allocation2] sm:$0xff] %vm414_vm1, %v367_v50  ;;  %v496_v52 = vpop.permute.xlu1 %495  ;;  %v2124_v50 = vld [vmem:[%s2513_s23 + $0x141] sm:$0xff] }
  0x89   : > { %544 = vst.msk [vmem:[#allocation2] sm:$0xff] %vm543_vm2, %v496_v52  ;;  %1025 = vrot.lane.b32.xlu0 %v2580_v43, %s2462_s7 }
  0x8a   : > { %1027 = vrot.lane.b32.xlu1 %v2591_v49, %s2462_s7 }
  0x8b   : > { %v369_v54 = vpop.permute.xlu0 %368 }
  0x8c   : > { %416 = vst.msk [vmem:[#allocation2 + $0x8] sm:$0xff] %vm414_vm1, %v369_v54  ;;  %v498_v55 = vpop.permute.xlu1 %497 }
  0x8d   : > { %545 = vst.msk [vmem:[#allocation2 + $0x8] sm:$0xff] %vm543_vm2, %v498_v55  ;;  %1154 = vrot.lane.b32.xlu0 %v729_v45, %s2463_s10  ;;  %v2155_v55 = vld [vmem:[%s2513_s23 + $0x13a] sm:$0xff] }
  0x8e   : > { %1156 = vrot.lane.b32.xlu1 %v1117_v53, %s2463_s10 }
  0x8f   : > { %v626_v59 = vpop.permute.xlu0 %625 }
  0x90   : > { %674 = vst.msk [vmem:[#allocation2] sm:$0xff] %vm673_vm3, %v626_v59  ;;  %v628_v43 = vpop.permute.xlu1 %627 }
  0x91   : > { %675 = vst.msk [vmem:[#allocation2 + $0x8] sm:$0xff] %vm673_vm3, %v628_v43  ;;  %1283 = vrot.lane.b32.xlu0 %v858_v48, %s2464_s13  ;;  %v1250_v43 = vpack.c.bf16 %v2156_v57, %v2155_v55  ;;  %v2163_v57 = vld [vmem:[%s2513_s23 + $0x19a] sm:$0xff] }
  0x92   : > { %382 = vrot.lane.b32.xlu1 %v729_v45, %s2457_s24  ;;  %v862_v45 = vpack.c.bf16 %v2060_v35, %v2059_v42  ;;  %v2067_v42 = vld [vmem:[%s2513_s23 + $0x182] sm:$0xff]  ;;  %v2068_v35 = vld [vmem:[%s2513_s23 + $0x18a] sm:$0xff] }
  0x93   : > { %v755_v62 = vpop.permute.xlu0 %754 }
  0x94   : > { %803 = vst.msk [vmem:[#allocation2] sm:$0xff] %vm802_vm4, %v755_v62  ;;  %v757_v63 = vpop.permute.xlu1 %756 }
  0x95   : > { %804 = vst.msk [vmem:[#allocation2 + $0x8] sm:$0xff] %vm802_vm4, %v757_v63  ;;  %1285 = vrot.lane.b32.xlu0 %v1246_v60, %s2464_s13 }
  0x96   : > { %384 = vrot.lane.b32.xlu1 %v1117_v53, %s2457_s24 }
  0x97   : > { %v884_v0 = vpop.permute.xlu0 %883 }
  0x98   : > { %932 = vst.msk [vmem:[#allocation2] sm:$0xff] %vm931_vm5, %v884_v0  ;;  %v886_v1 = vpop.permute.xlu1 %885 }
  0x99   : > { %933 = vst.msk [vmem:[#allocation2 + $0x8] sm:$0xff] %vm931_vm5, %v886_v1  ;;  %511 = vrot.lane.b32.xlu0 %v858_v48, %s2458_s25  ;;  %v2123_v48 = vld [vmem:[%s2513_s23 + $0x139] sm:$0xff] }
  0x9a   : > { %513 = vrot.lane.b32.xlu1 %v1246_v60, %s2458_s25  ;;  %v1121_v51 = vpack.c.bf16 %v2124_v50, %v2123_v48 }
  0x9b   : > { %v1014_v2 = vpop.permute.xlu0 %1013 }
  0x9c   : > { %1062 = vst.msk [vmem:[#allocation2] sm:$0xff] %vm1061_vm6, %v1014_v2  ;;  %v1016_v5 = vpop.permute.xlu1 %1015  ;;  %v2031_v2 = vld [vmem:[%s2513_s23 + $0x151] sm:$0xff] }
  0x9d   : > { %1063 = vst.msk [vmem:[#allocation2 + $0x8] sm:$0xff] %vm1061_vm6, %v1016_v5  ;;  %641 = vrot.lane.b32.xlu0 %v2591_v49, %s2459_s26  ;;  %v860_v49 = vpack.c.bf16 %v2056_v10, %v2055_v8  ;;  %v735_v5 = vpack.c.bf16 %v2032_v3, %v2031_v2  ;;  %v2064_v8 = vld [vmem:[%s2513_s23 + $0x15a] sm:$0xff] }
  0x9e   : > { %643 = vrot.lane.b32.xlu1 %v2608_v56, %s2459_s26 }
  0x9f   : > { %v1143_v7 = vpop.permute.xlu0 %1142 }
  0xa0   : > { %1191 = vst.msk [vmem:[#allocation2] sm:$0xff] %vm1190_vm7, %v1143_v7  ;;  %v1145_v11 = vpop.permute.xlu1 %1144  ;;  %v2063_v7 = vld [vmem:[%s2513_s23 + $0x152] sm:$0xff] }
  0xa1   : > { %1192 = vst.msk [vmem:[#allocation2 + $0x8] sm:$0xff] %vm1190_vm7, %v1145_v11  ;;  %770 = vrot.lane.b32.xlu0 %v1117_v53, %s2460_s27  ;;  %v864_v11 = vpack.c.bf16 %v2064_v8, %v2063_v7 }
  0xa2   : > { %772 = vrot.lane.b32.xlu1 %v731_v6, %s2460_s27 }
  0xa3   : > { %v1272_v12 = vpop.permute.xlu0 %1271 }
  0xa4   : > { %1320 = vst.msk [vmem:[#allocation2] sm:$0xff] %vm1319_vm8, %v1272_v12  ;;  %v371_v13 = vpop.permute.xlu1 %370 }
  0xa5   : > { %417 = vst.msk [vmem:[#allocation2 + $0x10] sm:$0xff] %vm414_vm1, %v371_v13  ;;  %899 = vrot.lane.b32.xlu0 %v1246_v60, %s2461_s28  ;;  %v2127_v13 = vld [vmem:[%s2513_s23 + $0x169] sm:$0xff] }
  0xa6   : > { %901 = vrot.lane.b32.xlu1 %v860_v49, %s2461_s28 }
  0xa7   : > { %v1274_v14 = vpop.permute.xlu0 %1273 }
  0xa8   : > { %1321 = vst.msk [vmem:[#allocation2 + $0x8] sm:$0xff] %vm1319_vm8, %v1274_v14  ;;  %v373_v17 = vpop.permute.xlu1 %372  ;;  %v2128_v14 = vld [vmem:[%s2513_s23 + $0x171] sm:$0xff] }
  0xa9   : > { %418 = vst.msk [vmem:[#allocation2 + $0x18] sm:$0xff] %vm414_vm1, %v373_v17  ;;  %1029 = vrot.lane.b32.xlu0 %v2608_v56, %s2462_s7  ;;  %v1123_v16 = vpack.c.bf16 %v2128_v14, %v2127_v13 }
  0xaa   : > { %1031 = vrot.lane.b32.xlu1 %v2621_v61, %s2462_s7 }
  0xab   : > { %v500_v20 = vpop.permute.xlu0 %499  ;;  %v1336_v21 = vld [vmem:[#allocation2] sm:$0xff] }
  0xac   : > { %546 = vst.msk [vmem:[#allocation2 + $0x10] sm:$0xff] %vm543_vm2, %v500_v20  ;;  %v502_v22 = vpop.permute.xlu1 %501  ;;  %2374 = vmatprep.mubr.bf16.mxu0 %v1336_v21  ;;  %v2159_v21 = vld [vmem:[%s2513_s23 + $0x16a] sm:$0xff] }
  0xad   : > { %547 = vst.msk [vmem:[#allocation2 + $0x18] sm:$0xff] %vm543_vm2, %v502_v22  ;;  %1158 = vrot.lane.b32.xlu0 %v731_v6, %s2463_s10  ;;  %v2160_v22 = vld [vmem:[%s2513_s23 + $0x172] sm:$0xff] }
  0xae   : > { %1160 = vrot.lane.b32.xlu1 %v1119_v19, %s2463_s10 }
  0xaf   : > { %v630_v25 = vpop.permute.xlu0 %629  ;;  %v1337_v56 = vld [vmem:[#allocation2 + $0x8] sm:$0xff] }
  0xb0   : > { %676 = vst.msk [vmem:[#allocation2 + $0x10] sm:$0xff] %vm673_vm3, %v630_v25  ;;  %v632_v26 = vpop.permute.xlu1 %631  ;;  %2375 = vmatmul.mubr.bf16.vlgmr.msra.gmra.mrb[0].mxu0 %v1337_v56  ;;  %v1252_v25 = vpack.c.bf16 %v2160_v22, %v2159_v21 }
  0xb1   : > { %677 = vst.msk [vmem:[#allocation2 + $0x18] sm:$0xff] %vm673_vm3, %v632_v26  ;;  %1287 = vrot.lane.b32.xlu0 %v860_v49, %s2464_s13 }
  0xb2   : > { %386 = vrot.lane.b32.xlu1 %v731_v6, %s2457_s24 }
  0xb3   : > { %v759_v29 = vpop.permute.xlu0 %758 }
  0xb4   : > { %805 = vst.msk [vmem:[#allocation2 + $0x10] sm:$0xff] %vm802_vm4, %v759_v29  ;;  %v761_v31 = vpop.permute.xlu1 %760  ;;  %v2003_v29 = vld [vmem:[%s2513_s23 + $0x180] sm:$0xff] }
  0xb5   : > { %806 = vst.msk [vmem:[#allocation2 + $0x18] sm:$0xff] %vm802_vm4, %v761_v31  ;;  %1289 = vrot.lane.b32.xlu0 %v1248_v28, %s2464_s13  ;;  %v2004_v31 = vld [vmem:[%s2513_s23 + $0x188] sm:$0xff] }
  0xb6   : > { %388 = vrot.lane.b32.xlu1 %v1119_v19, %s2457_s24 }
  0xb7   : > { %v888_v32 = vpop.permute.xlu0 %887 }
  0xb8   : > { %934 = vst.msk [vmem:[#allocation2 + $0x10] sm:$0xff] %vm931_vm5, %v888_v32  ;;  %v890_v30 = vpop.permute.xlu1 %889 }
  0xb9   : > { %935 = vst.msk [vmem:[#allocation2 + $0x18] sm:$0xff] %vm931_vm5, %v890_v30  ;;  %515 = vrot.lane.b32.xlu0 %v860_v49, %s2458_s25  ;;  %v608_v30 = vpack.c.bf16 %v2004_v31, %v2003_v29 }
  0xba   : > { %517 = vrot.lane.b32.xlu1 %v1248_v28, %s2458_s25 }
  0xbb   : > { %v1018_v33 = vpop.permute.xlu0 %1017 }
  0xbc   : > { %1064 = vst.msk [vmem:[#allocation2 + $0x10] sm:$0xff] %vm1061_vm6, %v1018_v33  ;;  %v1020_v38 = vpop.permute.xlu1 %1019 }
  0xbd   : > { %1065 = vst.msk [vmem:[#allocation2 + $0x18] sm:$0xff] %vm1061_vm6, %v1020_v38  ;;  %645 = vrot.lane.b32.xlu0 %v2621_v61, %s2459_s26 }
  0xbe   : > { %647 = vrot.lane.b32.xlu1 %v2655_v9, %s2459_s26 }
  0xbf   : > { %v1147_v41 = vpop.permute.xlu0 %1146 }
  0xc0   : > { %1193 = vst.msk [vmem:[#allocation2 + $0x10] sm:$0xff] %vm1190_vm7, %v1147_v41  ;;  %v1149_v44 = vpop.permute.xlu1 %1148 }
  0xc1   : > { %1194 = vst.msk [vmem:[#allocation2 + $0x18] sm:$0xff] %vm1190_vm7, %v1149_v44  ;;  %774 = vrot.lane.b32.xlu0 %v1119_v19, %s2460_s27 }
  0xc2   : > { %776 = vrot.lane.b32.xlu1 %v733_v40, %s2460_s27 }
  0xc3   : > { %v1276_v61 = vpop.permute.xlu0 %1275 }
  0xc4   : > { %1322 = vst.msk [vmem:[#allocation2 + $0x10] sm:$0xff] %vm1319_vm8, %v1276_v61  ;;  %v375_v46 = vpop.permute.xlu1 %374 }
  0xc5   : > { %419 = vst.msk [vmem:[#allocation2 + $0x20] sm:$0xff] %vm414_vm1, %v375_v46  ;;  %903 = vrot.lane.b32.xlu0 %v1248_v28, %s2461_s28  ;;  %v2100_v46 = vld [vmem:[%s2513_s23 + $0x1a0] sm:$0xff] }
  0xc6   : > { %905 = vrot.lane.b32.xlu1 %v862_v45, %s2461_s28 }
  0xc7   : > { %v1278_v47 = vpop.permute.xlu0 %1277 }
  0xc8   : > { %1323 = vst.msk [vmem:[#allocation2 + $0x18] sm:$0xff] %vm1319_vm8, %v1278_v47  ;;  %v377_v39 = vpop.permute.xlu1 %376 }
  0xc9   : > { %420 = vst.msk [vmem:[#allocation2 + $0x28] sm:$0xff] %vm414_vm1, %v377_v39  ;;  %1033 = vrot.lane.b32.xlu0 %v2655_v9, %s2462_s7  ;;  %v2131_v39 = vld [vmem:[%s2513_s23 + $0x199] sm:$0xff] }
  0xca   : > { %1035 = vrot.lane.b32.xlu1 %v2673_v18, %s2462_s7 }
  0xcb   : > { %v504_v52 = vpop.permute.xlu0 %503  ;;  %v1338_v53 = vld [vmem:[#allocation2 + $0x10] sm:$0xff] }
  0xcc   : > { %548 = vst.msk [vmem:[#allocation2 + $0x20] sm:$0xff] %vm543_vm2, %v504_v52  ;;  %v506_v54 = vpop.permute.xlu1 %505  ;;  %2378 = vmatprep.mubr.bf16.mxu0 %v1338_v53 }
  0xcd   : > { %549 = vst.msk [vmem:[#allocation2 + $0x28] sm:$0xff] %vm543_vm2, %v506_v54  ;;  %1162 = vrot.lane.b32.xlu0 %v733_v40, %s2463_s10 }
  0xce   : > { %1164 = vrot.lane.b32.xlu1 %v1121_v51, %s2463_s10 }
  0xcf   : > { %v634_v58 = vpop.permute.xlu0 %633  ;;  %v1339_v9 = vld [vmem:[#allocation2 + $0x18] sm:$0xff] }
  0xd0   : > { %678 = vst.msk [vmem:[#allocation2 + $0x20] sm:$0xff] %vm673_vm3, %v634_v58  ;;  %v636_v59 = vpop.permute.xlu1 %635  ;;  %2379 = vmatmul.mubr.bf16.gmra.mrb[4].mxu0 %v1339_v9  ;;  %v2164_v58 = vld [vmem:[%s2513_s23 + $0x1a2] sm:$0xff] }
  0xd1   : > { %679 = vst.msk [vmem:[#allocation2 + $0x28] sm:$0xff] %vm673_vm3, %v636_v59  ;;  %1291 = vrot.lane.b32.xlu0 %v862_v45, %s2464_s13  ;;  %v1254_v59 = vpack.c.bf16 %v2164_v58, %v2163_v57 }
  0xd2   : > { %390 = vrot.lane.b32.xlu1 %v733_v40, %s2457_s24  ;;  %v737_v40 = vpack.c.bf16 %v2036_v36, %v2035_v34 }
  0xd3   : > { %v763_v60 = vpop.permute.xlu0 %762 }
  0xd4   : > { %807 = vst.msk [vmem:[#allocation2 + $0x20] sm:$0xff] %vm802_vm4, %v763_v60  ;;  %v765_v62 = vpop.permute.xlu1 %764 }
  0xd5   : > { %808 = vst.msk [vmem:[#allocation2 + $0x28] sm:$0xff] %vm802_vm4, %v765_v62  ;;  %1293 = vrot.lane.b32.xlu0 %v1250_v43, %s2464_s13 }
  0xd6   : > { %392 = vrot.lane.b32.xlu1 %v1121_v51, %s2457_s24 }
  0xd7   : > { %v892_v63 = vpop.permute.xlu0 %891 }
  0xd8   : > { %936 = vst.msk [vmem:[#allocation2 + $0x20] sm:$0xff] %vm931_vm5, %v892_v63  ;;  %v894_v0 = vpop.permute.xlu1 %893 }
  0xd9   : > { %937 = vst.msk [vmem:[#allocation2 + $0x28] sm:$0xff] %vm931_vm5, %v894_v0  ;;  %519 = vrot.lane.b32.xlu0 %v862_v45, %s2458_s25  ;;  %v866_v45 = vpack.c.bf16 %v2068_v35, %v2067_v42 }
  0xda   : > { %521 = vrot.lane.b32.xlu1 %v1250_v43, %s2458_s25 }
  0xdb   : > { %v1022_v1 = vpop.permute.xlu0 %1021 }
  0xdc   : > { %1066 = vst.msk [vmem:[#allocation2 + $0x20] sm:$0xff] %vm1061_vm6, %v1022_v1  ;;  %v1024_v4 = vpop.permute.xlu1 %1023 }
  0xdd   : > { %1067 = vst.msk [vmem:[#allocation2 + $0x28] sm:$0xff] %vm1061_vm6, %v1024_v4  ;;  %649 = vrot.lane.b32.xlu0 %v2673_v18, %s2459_s26 }
  0xde   : > { %651 = vrot.lane.b32.xlu1 %v2695_v27, %s2459_s26 }
  0xdf   : > { %v1151_v6 = vpop.permute.xlu0 %1150 }
  0xe0   : > { %1195 = vst.msk [vmem:[#allocation2 + $0x20] sm:$0xff] %vm1190_vm7, %v1151_v6  ;;  %v1153_v10 = vpop.permute.xlu1 %1152 }
  0xe1   : > { %1196 = vst.msk [vmem:[#allocation2 + $0x28] sm:$0xff] %vm1190_vm7, %v1153_v10  ;;  %778 = vrot.lane.b32.xlu0 %v1121_v51, %s2460_s27  ;;  %v2132_v51 = vld [vmem:[%s2513_s23 + $0x1a1] sm:$0xff] }
  0xe2   : > { %780 = vrot.lane.b32.xlu1 %v735_v5, %s2460_s27  ;;  %v1125_v53 = vpack.c.bf16 %v2132_v51, %v2131_v39 }
  0xe3   : > { %v1280_v18 = vpop.permute.xlu0 %1279 }
  0xe4   : > { %1324 = vst.msk [vmem:[#allocation2 + $0x20] sm:$0xff] %vm1319_vm8, %v1280_v18  ;;  %v379_v49 = vpop.permute.xlu1 %378 }
  0xe5   : > { %421 = vst.msk [vmem:[#allocation2 + $0x30] sm:$0xff] %vm414_vm1, %v379_v49  ;;  %907 = vrot.lane.b32.xlu0 %v1250_v43, %s2461_s28 }
  0xe6   : > { %909 = vrot.lane.b32.xlu1 %v864_v11, %s2461_s28 }
  0xe7   : > { %v1282_v12 = vpop.permute.xlu0 %1281 }
  0xe8   : > { %1325 = vst.msk [vmem:[#allocation2 + $0x28] sm:$0xff] %vm1319_vm8, %v1282_v12  ;;  %v381_v15 = vpop.permute.xlu1 %380 }
  0xe9   : > { %422 = vst.msk [vmem:[#allocation2 + $0x38] sm:$0xff] %vm414_vm1, %v381_v15  ;;  %1037 = vrot.lane.b32.xlu0 %v2695_v27, %s2462_s7 }
  0xea   : > { %1039 = vrot.lane.b32.xlu1 %v2713_v37, %s2462_s7 }
  0xeb   : > { %v508_v17 = vpop.permute.xlu0 %507  ;;  %v1340_v19 = vld [vmem:[#allocation2 + $0x20] sm:$0xff] }
  0xec   : > { %550 = vst.msk [vmem:[#allocation2 + $0x30] sm:$0xff] %vm543_vm2, %v508_v17  ;;  %v510_v20 = vpop.permute.xlu1 %509  ;;  %2382 = vmatprep.mubr.bf16.mxu0 %v1340_v19 }
  0xed   : > { %551 = vst.msk [vmem:[#allocation2 + $0x38] sm:$0xff] %vm543_vm2, %v510_v20  ;;  %1166 = vrot.lane.b32.xlu0 %v735_v5, %s2463_s10 }
  0xee   : > { %1168 = vrot.lane.b32.xlu1 %v1123_v16, %s2463_s10 }
  0xef   : > { %v638_v23 = vpop.permute.xlu0 %637  ;;  %v1341_v27 = vld [vmem:[#allocation2 + $0x28] sm:$0xff] }
  0xf0   : > { %680 = vst.msk [vmem:[#allocation2 + $0x30] sm:$0xff] %vm673_vm3, %v638_v23  ;;  %v640_v24 = vpop.permute.xlu1 %639  ;;  %2383 = vmatmul.mubr.bf16.gmra.mrb[8].mxu0 %v1341_v27 }
  0xf1   : > { %681 = vst.msk [vmem:[#allocation2 + $0x38] sm:$0xff] %vm673_vm3, %v640_v24  ;;  %1295 = vrot.lane.b32.xlu0 %v864_v11, %s2464_s13 }
  0xf2   : > { %394 = vrot.lane.b32.xlu1 %v735_v5, %s2457_s24 }
  0xf3   : > { %v767_v56 = vpop.permute.xlu0 %766 }
  0xf4   : > { %809 = vst.msk [vmem:[#allocation2 + $0x30] sm:$0xff] %vm802_vm4, %v767_v56  ;;  %v769_v26 = vpop.permute.xlu1 %768 }
  0xf5   : > { %810 = vst.msk [vmem:[#allocation2 + $0x38] sm:$0xff] %vm802_vm4, %v769_v26  ;;  %1297 = vrot.lane.b32.xlu0 %v1252_v25, %s2464_s13 }
  0xf6   : > { %396 = vrot.lane.b32.xlu1 %v1123_v16, %s2457_s24 }
  0xf7   : > { %v896_v28 = vpop.permute.xlu0 %895 }
  0xf8   : > { %938 = vst.msk [vmem:[#allocation2 + $0x30] sm:$0xff] %vm931_vm5, %v896_v28  ;;  %v898_v32 = vpop.permute.xlu1 %897 }
  0xf9   : > { %939 = vst.msk [vmem:[#allocation2 + $0x38] sm:$0xff] %vm931_vm5, %v898_v32  ;;  %523 = vrot.lane.b32.xlu0 %v864_v11, %s2458_s25 }
  0xfa   : > { %525 = vrot.lane.b32.xlu1 %v1252_v25, %s2458_s25 }
  0xfb   : > { %v1026_v33 = vpop.permute.xlu0 %1025 }
  0xfc   : > { %1068 = vst.msk [vmem:[#allocation2 + $0x30] sm:$0xff] %vm1061_vm6, %v1026_v33  ;;  %v1028_v38 = vpop.permute.xlu1 %1027 }
  0xfd   : > { %1069 = vst.msk [vmem:[#allocation2 + $0x38] sm:$0xff] %vm1061_vm6, %v1028_v38  ;;  %653 = vrot.lane.b32.xlu0 %v2713_v37, %s2459_s26  ;;  %v2099_v37 = vld [vmem:[%s2513_s23 + $0x198] sm:$0xff]  ;;  %s1969_s23 = sshll.u32 %s2496_s16, 5 }
  0xfe   : > { %655 = vrot.lane.b32.xlu1 %v608_v30, %s2459_s26  ;;  %v996_v48 = vpack.c.bf16 %v2100_v46, %v2099_v37  ;;  %p207_p4 = scmp.lt.s32.totalorder %s1969_s23, 63 }
  0xff   : > { %v1155_v41 = vpop.permute.xlu0 %1154 }
 0x100   : > { %1197 = vst.msk [vmem:[#allocation2 + $0x30] sm:$0xff] %vm1190_vm7, %v1155_v41  ;;  %v1157_v44 = vpop.permute.xlu1 %1156  ;;  %s3034_s23 = smov (!%p207_p4, %s1969_s23), 63 }
 0x101   : > { %1198 = vst.msk [vmem:[#allocation2 + $0x38] sm:$0xff] %vm1190_vm7, %v1157_v44  ;;  %782 = vrot.lane.b32.xlu0 %v1123_v16, %s2460_s27  ;;  %s1970_s16 = sshll.u32 %s3034_s23, 2 }
 0x102   : > { %784 = vrot.lane.b32.xlu1 %v737_v40, %s2460_s27  ;;  %s3000_s26 = scalar_lea.vmem %s3030_s2, %s1970_s16  ;;  %s1971_s27 = sshll.u32 %s2504_s17, 3 }
 0x103   : > { %v1284_v61 = vpop.permute.xlu0 %1283  ;;  %s215_s30 = scalar_lea.vmem %s3031_s3, %s1971_s27 }
 0x104   : > { %1326 = vst.msk [vmem:[#allocation2 + $0x30] sm:$0xff] %vm1319_vm8, %v1284_v61  ;;  %v383_v47 = vpop.permute.xlu1 %382 }
 0x105   : > { %423 = vst.msk [vmem:[#allocation2 + $0x40] sm:$0xff] %vm414_vm1, %v383_v47  ;;  %911 = vrot.lane.b32.xlu0 %v1252_v25, %s2461_s28 }
 0x106   : > { %913 = vrot.lane.b32.xlu1 %v866_v45, %s2461_s28 }
 0x107   : > { %v1286_v50 = vpop.permute.xlu0 %1285 }
 0x108   : > { %1327 = vst.msk [vmem:[#allocation2 + $0x38] sm:$0xff] %vm1319_vm8, %v1286_v50  ;;  %v385_v52 = vpop.permute.xlu1 %384 }
 0x109   : > { %424 = vst.msk [vmem:[#allocation2 + $0x48] sm:$0xff] %vm414_vm1, %v385_v52  ;;  %1041 = vrot.lane.b32.xlu0 %v608_v30, %s2462_s7 }
 0x10a   : > { %1043 = vrot.lane.b32.xlu1 %v996_v48, %s2462_s7  ;;  %s219_s7 = scalar_lea.vmem %s3032_s4, %s1971_s27 }
 0x10b   : > { %v512_v54 = vpop.permute.xlu0 %511  ;;  %v1342_v55 = vld [vmem:[#allocation2 + $0x30] sm:$0xff] }
 0x10c   : > { %552 = vst.msk [vmem:[#allocation2 + $0x40] sm:$0xff] %vm543_vm2, %v512_v54  ;;  %v514_v9 = vpop.permute.xlu1 %513  ;;  %2386 = vmatprep.mubr.bf16.mxu0 %v1342_v55 }
 0x10d   : > { %553 = vst.msk [vmem:[#allocation2 + $0x48] sm:$0xff] %vm543_vm2, %v514_v9  ;;  %1170 = vrot.lane.b32.xlu0 %v737_v40, %s2463_s10 }
 0x10e   : > { %1172 = vrot.lane.b32.xlu1 %v1125_v53, %s2463_s10 }
 0x10f   : > { %v642_v43 = vpop.permute.xlu0 %641  ;;  %v1343_v60 = vld [vmem:[#allocation2 + $0x38] sm:$0xff] }
 0x110   : > { %682 = vst.msk [vmem:[#allocation2 + $0x40] sm:$0xff] %vm673_vm3, %v642_v43  ;;  %v644_v62 = vpop.permute.xlu1 %643  ;;  %2387 = vmatmul.mubr.bf16.gmra.mrb[12].mxu0 %v1343_v60 }
 0x111   : > { %683 = vst.msk [vmem:[#allocation2 + $0x48] sm:$0xff] %vm673_vm3, %v644_v62  ;;  %1299 = vrot.lane.b32.xlu0 %v866_v45, %s2464_s13 }
 0x112   : > { %1301 = vrot.lane.b32.xlu1 %v1254_v59, %s2464_s13 }
 0x113   : > { %v771_v63 = vpop.permute.xlu0 %770 }
 0x114   : > { %811 = vst.msk [vmem:[#allocation2 + $0x40] sm:$0xff] %vm802_vm4, %v771_v63  ;;  %v773_v0 = vpop.permute.xlu1 %772 }
 0x115   : > { %812 = vst.msk [vmem:[#allocation2 + $0x48] sm:$0xff] %vm802_vm4, %v773_v0 }
 0x117   : > { %v900_v1 = vpop.permute.xlu0 %899 }
 0x118   : > { %940 = vst.msk [vmem:[#allocation2 + $0x40] sm:$0xff] %vm931_vm5, %v900_v1  ;;  %v902_v2 = vpop.permute.xlu1 %901 }
 0x119   : > { %941 = vst.msk [vmem:[#allocation2 + $0x48] sm:$0xff] %vm931_vm5, %v902_v2 }
 0x11b   : > { %v1030_v3 = vpop.permute.xlu0 %1029 }
 0x11c   : > { %1070 = vst.msk [vmem:[#allocation2 + $0x40] sm:$0xff] %vm1061_vm6, %v1030_v3  ;;  %v1032_v4 = vpop.permute.xlu1 %1031 }
 0x11d   : > { %1071 = vst.msk [vmem:[#allocation2 + $0x48] sm:$0xff] %vm1061_vm6, %v1032_v4 }
 0x11f   : > { %v1159_v5 = vpop.permute.xlu0 %1158 }
 0x120   : > { %1199 = vst.msk [vmem:[#allocation2 + $0x40] sm:$0xff] %vm1190_vm7, %v1159_v5  ;;  %v1161_v6 = vpop.permute.xlu1 %1160 }
 0x121   : > { %1200 = vst.msk [vmem:[#allocation2 + $0x48] sm:$0xff] %vm1190_vm7, %v1161_v6 }
 0x123   : > { %v1288_v7 = vpop.permute.xlu0 %1287 }
 0x124   : > { %1328 = vst.msk [vmem:[#allocation2 + $0x40] sm:$0xff] %vm1319_vm8, %v1288_v7  ;;  %v387_v8 = vpop.permute.xlu1 %386 }
 0x125   : > { %425 = vst.msk [vmem:[#allocation2 + $0x50] sm:$0xff] %vm414_vm1, %v387_v8 }
 0x127   : > { %v1290_v10 = vpop.permute.xlu0 %1289 }
 0x128   : > { %1329 = vst.msk [vmem:[#allocation2 + $0x48] sm:$0xff] %vm1319_vm8, %v1290_v10  ;;  %v389_v11 = vpop.permute.xlu1 %388 }
 0x129   : > { %426 = vst.msk [vmem:[#allocation2 + $0x58] sm:$0xff] %vm414_vm1, %v389_v11 }
 0x12b   : > { %v516_v18 = vpop.permute.xlu0 %515  ;;  %v1344_v49 = vld [vmem:[#allocation2 + $0x40] sm:$0xff] }
 0x12c   : > { %554 = vst.msk [vmem:[#allocation2 + $0x50] sm:$0xff] %vm543_vm2, %v516_v18  ;;  %v518_v12 = vpop.permute.xlu1 %517  ;;  %2390 = vmatprep.mubr.bf16.mxu1 %v1344_v49 }
 0x12d   : > { %555 = vst.msk [vmem:[#allocation2 + $0x58] sm:$0xff] %vm543_vm2, %v518_v12 }
 0x12f   : > { %v646_v13 = vpop.permute.xlu0 %645  ;;  %v1345_v14 = vld [vmem:[#allocation2 + $0x48] sm:$0xff] }
 0x130   : > { %684 = vst.msk [vmem:[#allocation2 + $0x50] sm:$0xff] %vm673_vm3, %v646_v13  ;;  %v648_v15 = vpop.permute.xlu1 %647  ;;  %2391 = vmatmul.mubr.bf16.vlgmr.msra.gmra.mrb[0].mxu1 %v1345_v14 }
 0x131   : > { %685 = vst.msk [vmem:[#allocation2 + $0x58] sm:$0xff] %vm673_vm3, %v648_v15 }
 0x133   : > { %v775_v16 = vpop.permute.xlu0 %774 }
 0x134   : > { %813 = vst.msk [vmem:[#allocation2 + $0x50] sm:$0xff] %vm802_vm4, %v775_v16  ;;  %v777_v17 = vpop.permute.xlu1 %776 }
 0x135   : > { %814 = vst.msk [vmem:[#allocation2 + $0x58] sm:$0xff] %vm802_vm4, %v777_v17 }
 0x137   : > { %v904_v19 = vpop.permute.xlu0 %903 }
 0x138   : > { %942 = vst.msk [vmem:[#allocation2 + $0x50] sm:$0xff] %vm931_vm5, %v904_v19  ;;  %v906_v20 = vpop.permute.xlu1 %905 }
 0x139   : > { %943 = vst.msk [vmem:[#allocation2 + $0x58] sm:$0xff] %vm931_vm5, %v906_v20 }
 0x13b   : > { %v1034_v21 = vpop.permute.xlu0 %1033 }
 0x13c   : > { %1072 = vst.msk [vmem:[#allocation2 + $0x50] sm:$0xff] %vm1061_vm6, %v1034_v21  ;;  %v1036_v22 = vpop.permute.xlu1 %1035 }
 0x13d   : > { %1073 = vst.msk [vmem:[#allocation2 + $0x58] sm:$0xff] %vm1061_vm6, %v1036_v22 }
 0x13f   : > { %v1163_v23 = vpop.permute.xlu0 %1162 }
 0x140   : > { %1201 = vst.msk [vmem:[#allocation2 + $0x50] sm:$0xff] %vm1190_vm7, %v1163_v23  ;;  %v1165_v27 = vpop.permute.xlu1 %1164 }
 0x141   : > { %1202 = vst.msk [vmem:[#allocation2 + $0x58] sm:$0xff] %vm1190_vm7, %v1165_v27 }
 0x143   : > { %v1292_v24 = vpop.permute.xlu0 %1291 }
 0x144   : > { %1330 = vst.msk [vmem:[#allocation2 + $0x50] sm:$0xff] %vm1319_vm8, %v1292_v24  ;;  %v391_v25 = vpop.permute.xlu1 %390 }
 0x145   : > { %427 = vst.msk [vmem:[#allocation2 + $0x60] sm:$0xff] %vm414_vm1, %v391_v25 }
 0x147   : > { %v1294_v56 = vpop.permute.xlu0 %1293 }
 0x148   : > { %1331 = vst.msk [vmem:[#allocation2 + $0x58] sm:$0xff] %vm1319_vm8, %v1294_v56  ;;  %v393_v26 = vpop.permute.xlu1 %392 }
 0x149   : > { %428 = vst.msk [vmem:[#allocation2 + $0x68] sm:$0xff] %vm414_vm1, %v393_v26 }
 0x14b   : > { %v520_v28 = vpop.permute.xlu0 %519  ;;  %v1346_v29 = vld [vmem:[#allocation2 + $0x50] sm:$0xff] }
 0x14c   : > { %556 = vst.msk [vmem:[#allocation2 + $0x60] sm:$0xff] %vm543_vm2, %v520_v28  ;;  %v522_v31 = vpop.permute.xlu1 %521  ;;  %2394 = vmatprep.mubr.bf16.mxu1 %v1346_v29 }
 0x14d   : > { %557 = vst.msk [vmem:[#allocation2 + $0x68] sm:$0xff] %vm543_vm2, %v522_v31 }
 0x14f   : > { %v650_v32 = vpop.permute.xlu0 %649  ;;  %v1347_v30 = vld [vmem:[#allocation2 + $0x58] sm:$0xff] }
 0x150   : > { %686 = vst.msk [vmem:[#allocation2 + $0x60] sm:$0xff] %vm673_vm3, %v650_v32  ;;  %v652_v33 = vpop.permute.xlu1 %651  ;;  %2395 = vmatmul.mubr.bf16.gmra.mrb[4].mxu1 %v1347_v30 }
 0x151   : > { %687 = vst.msk [vmem:[#allocation2 + $0x68] sm:$0xff] %vm673_vm3, %v652_v33 }
 0x153   : > { %v779_v34 = vpop.permute.xlu0 %778 }
 0x154   : > { %815 = vst.msk [vmem:[#allocation2 + $0x60] sm:$0xff] %vm802_vm4, %v779_v34  ;;  %v781_v36 = vpop.permute.xlu1 %780 }
 0x155   : > { %816 = vst.msk [vmem:[#allocation2 + $0x68] sm:$0xff] %vm802_vm4, %v781_v36 }
 0x157   : > { %v908_v38 = vpop.permute.xlu0 %907 }
 0x158   : > { %944 = vst.msk [vmem:[#allocation2 + $0x60] sm:$0xff] %vm931_vm5, %v908_v38  ;;  %v910_v40 = vpop.permute.xlu1 %909 }
 0x159   : > { %945 = vst.msk [vmem:[#allocation2 + $0x68] sm:$0xff] %vm931_vm5, %v910_v40 }
 0x15b   : > { %v1038_v41 = vpop.permute.xlu0 %1037 }
 0x15c   : > { %1074 = vst.msk [vmem:[#allocation2 + $0x60] sm:$0xff] %vm1061_vm6, %v1038_v41  ;;  %v1040_v42 = vpop.permute.xlu1 %1039 }
 0x15d   : > { %1075 = vst.msk [vmem:[#allocation2 + $0x68] sm:$0xff] %vm1061_vm6, %v1040_v42 }
 0x15f   : > { %v1167_v35 = vpop.permute.xlu0 %1166 }
 0x160   : > { %1203 = vst.msk [vmem:[#allocation2 + $0x60] sm:$0xff] %vm1190_vm7, %v1167_v35  ;;  %v1169_v44 = vpop.permute.xlu1 %1168 }
 0x161   : > { %1204 = vst.msk [vmem:[#allocation2 + $0x68] sm:$0xff] %vm1190_vm7, %v1169_v44 }
 0x163   : > { %v1296_v45 = vpop.permute.xlu0 %1295 }
 0x164   : > { %1332 = vst.msk [vmem:[#allocation2 + $0x60] sm:$0xff] %vm1319_vm8, %v1296_v45  ;;  %v395_v61 = vpop.permute.xlu1 %394 }
 0x165   : > { %429 = vst.msk [vmem:[#allocation2 + $0x70] sm:$0xff] %vm414_vm1, %v395_v61 }
 0x167   : > { %v1298_v37 = vpop.permute.xlu0 %1297 }
 0x168   : > { %1333 = vst.msk [vmem:[#allocation2 + $0x68] sm:$0xff] %vm1319_vm8, %v1298_v37  ;;  %v397_v46 = vpop.permute.xlu1 %396 }
 0x169   : > { %430 = vst.msk [vmem:[#allocation2 + $0x78] sm:$0xff] %vm414_vm1, %v397_v46 }
 0x16b   : > { %v524_v47 = vpop.permute.xlu0 %523  ;;  %v1348_v48 = vld [vmem:[#allocation2 + $0x60] sm:$0xff] }
 0x16c   : > { %558 = vst.msk [vmem:[#allocation2 + $0x70] sm:$0xff] %vm543_vm2, %v524_v47  ;;  %v526_v50 = vpop.permute.xlu1 %525  ;;  %2398 = vmatprep.mubr.bf16.mxu1 %v1348_v48 }
 0x16d   : > { %559 = vst.msk [vmem:[#allocation2 + $0x78] sm:$0xff] %vm543_vm2, %v526_v50 }
 0x16f   : > { %v654_v39 = vpop.permute.xlu0 %653  ;;  %v1349_v51 = vld [vmem:[#allocation2 + $0x68] sm:$0xff] }
 0x170   : > { %688 = vst.msk [vmem:[#allocation2 + $0x70] sm:$0xff] %vm673_vm3, %v654_v39  ;;  %v656_v52 = vpop.permute.xlu1 %655  ;;  %2399 = vmatmul.mubr.bf16.gmra.mrb[8].mxu1 %v1349_v51 }
 0x171   : > { %689 = vst.msk [vmem:[#allocation2 + $0x78] sm:$0xff] %vm673_vm3, %v656_v52 }
 0x173   : > { %v783_v53 = vpop.permute.xlu0 %782 }
 0x174   : > { %817 = vst.msk [vmem:[#allocation2 + $0x70] sm:$0xff] %vm802_vm4, %v783_v53  ;;  %v785_v54 = vpop.permute.xlu1 %784 }
 0x175   : > { %818 = vst.msk [vmem:[#allocation2 + $0x78] sm:$0xff] %vm802_vm4, %v785_v54 }
 0x177   : > { %v912_v55 = vpop.permute.xlu0 %911 }
 0x178   : > { %946 = vst.msk [vmem:[#allocation2 + $0x70] sm:$0xff] %vm931_vm5, %v912_v55  ;;  %v914_v57 = vpop.permute.xlu1 %913 }
 0x179   : > { %947 = vst.msk [vmem:[#allocation2 + $0x78] sm:$0xff] %vm931_vm5, %v914_v57 }
 0x17b   : > { %v1042_v58 = vpop.permute.xlu0 %1041 }
 0x17c   : > { %1076 = vst.msk [vmem:[#allocation2 + $0x70] sm:$0xff] %vm1061_vm6, %v1042_v58  ;;  %v1044_v9 = vpop.permute.xlu1 %1043 }
 0x17d   : > { %1077 = vst.msk [vmem:[#allocation2 + $0x78] sm:$0xff] %vm1061_vm6, %v1044_v9 }
 0x17f   : > { %v1171_v59 = vpop.permute.xlu0 %1170 }
 0x180   : > { %1205 = vst.msk [vmem:[#allocation2 + $0x70] sm:$0xff] %vm1190_vm7, %v1171_v59  ;;  %v1173_v43 = vpop.permute.xlu1 %1172 }
 0x181   : > { %1206 = vst.msk [vmem:[#allocation2 + $0x78] sm:$0xff] %vm1190_vm7, %v1173_v43 }
 0x183   : > { %v1300_v60 = vpop.permute.xlu0 %1299  ;;  %v2376_v62 = vpop.f32.mrb[0].mxu0 }
 0x184   : > { %1334 = vst.msk [vmem:[#allocation2 + $0x70] sm:$0xff] %vm1319_vm8, %v1300_v60  ;;  %v1302_v63 = vpop.permute.xlu1 %1301  ;;  %v1450_v0 = vpop.f32.mrb[1].mxu0  ;;  %v1776_v8 = vmul.f32 %v2376_v62, %v2376_v62 }
 0x185   : > { %1335 = vst.msk [vmem:[#allocation2 + $0x78] sm:$0xff] %vm1319_vm8, %v1302_v63  ;;  %v2377_v1 = vpop.f32.mrb[2].mxu0  ;;  %v1774_v4 = vmul.f32 %v1450_v0, %v1450_v0 }
 0x186   : > { %v2247_v2 = vpack.c.bf16 %v2377_v1, %v2376_v62  ;;  %v1453_v3 = vpop.f32.mrb[3].mxu0  ;;  %v1777_v18 = vmul.f32 %v2377_v1, %v2377_v1 }
 0x187   : > { %v2242_v5 = vpack.c.bf16 %v1453_v3, %v1450_v0  ;;  %v1737_v6 = vadd.f32 %v1453_v3, %v1450_v0  ;;  %v1775_v7 = vmul.f32 %v1453_v3, %v1453_v3 }
 0x188   : > { %2319 = vst [vmem:[%s3000_s26 + $0x8] sm:$0xff] %v2247_v2  }
 0x189   : > { %2243 = vst [vmem:[%s3000_s26] sm:$0xff] %v2242_v5   ;;  %v1738_v10 = vadd.f32 %v2376_v62, %v1737_v6  ;;  %v1806_v11 = vadd.f32 %v1775_v7, %v1774_v4 }
 0x18b   : > { %v1807_v49 = vadd.f32 %v1806_v11, %v1776_v8  ;;  %v1350_v12 = vld [vmem:[#allocation2 + $0x70] sm:$0xff]  ;;  %v1739_v13 = vadd.f32 %v2377_v1, %v1738_v10 }
 0x18c   : > { %2402 = vmatprep.mubr.bf16.mxu1 %v1350_v12  ;;  %v1351_v14 = vld [vmem:[#allocation2 + $0x78] sm:$0xff] }
 0x18d   : > { %2403 = vmatmul.mubr.bf16.gmra.mrb[12].mxu1 %v1351_v14  ;;  %v1808_v15 = vadd.f32 %v1807_v49, %v1777_v18 }
 0x1a3   : > { %v2380_v16 = vpop.f32.mrb[4].mxu0 }
 0x1a4   : > { %v1466_v17 = vpop.f32.mrb[5].mxu0  ;;  %v1780_v26 = vmul.f32 %v2380_v16, %v2380_v16 }
 0x1a5   : > { %v1740_v19 = vadd.f32 %v1739_v13, %v1466_v17  ;;  %v1778_v20 = vmul.f32 %v1466_v17, %v1466_v17  ;;  %v2381_v21 = vpop.f32.mrb[6].mxu0 }
 0x1a6   : > { %v2257_v22 = vpack.c.bf16 %v2381_v21, %v2380_v16  ;;  %v1469_v23 = vpop.f32.mrb[7].mxu0  ;;  %v1781_v31 = vmul.f32 %v2381_v21, %v2381_v21 }
 0x1a7   : > { %v1809_v27 = vadd.f32 %v1808_v15, %v1778_v20  ;;  %v2252_v24 = vpack.c.bf16 %v1469_v23, %v1466_v17  ;;  %v1741_v25 = vadd.f32 %v1740_v19, %v1469_v23  ;;  %v1779_v56 = vmul.f32 %v1469_v23, %v1469_v23 }
 0x1a8   : > { %2321 = vst [vmem:[%s3000_s26 + $0x18] sm:$0xff] %v2257_v22  }
 0x1a9   : > { %2320 = vst [vmem:[%s3000_s26 + $0x10] sm:$0xff] %v2252_v24   ;;  %v1742_v28 = vadd.f32 %v2380_v16, %v1741_v25  ;;  %v1810_v29 = vadd.f32 %v1809_v27, %v1779_v56 }
 0x1ab   : > { %v1811_v32 = vadd.f32 %v1810_v29, %v1780_v26  ;;  %v1743_v30 = vadd.f32 %v2381_v21, %v1742_v28 }
 0x1ad   : > { %v1812_v33 = vadd.f32 %v1811_v32, %v1781_v31 }
 0x1c3   : > { %v2384_v34 = vpop.f32.mrb[8].mxu0 }
 0x1c4   : > { %v1482_v36 = vpop.f32.mrb[9].mxu0  ;;  %v1784_v46 = vmul.f32 %v2384_v34, %v2384_v34 }
 0x1c5   : > { %v1744_v38 = vadd.f32 %v1743_v30, %v1482_v36  ;;  %v1782_v40 = vmul.f32 %v1482_v36, %v1482_v36  ;;  %v2385_v41 = vpop.f32.mrb[10].mxu0 }
 0x1c6   : > { %v2267_v42 = vpack.c.bf16 %v2385_v41, %v2384_v34  ;;  %v1485_v35 = vpop.f32.mrb[11].mxu0  ;;  %v1785_v50 = vmul.f32 %v2385_v41, %v2385_v41 }
 0x1c7   : > { %v1813_v44 = vadd.f32 %v1812_v33, %v1782_v40  ;;  %v2262_v45 = vpack.c.bf16 %v1485_v35, %v1482_v36  ;;  %v1745_v61 = vadd.f32 %v1744_v38, %v1485_v35  ;;  %v1783_v37 = vmul.f32 %v1485_v35, %v1485_v35 }
 0x1c8   : > { %2323 = vst [vmem:[%s3000_s26 + $0x28] sm:$0xff] %v2267_v42  }
 0x1c9   : > { %2322 = vst [vmem:[%s3000_s26 + $0x20] sm:$0xff] %v2262_v45   ;;  %v1746_v47 = vadd.f32 %v2384_v34, %v1745_v61  ;;  %v1814_v48 = vadd.f32 %v1813_v44, %v1783_v37 }
 0x1cb   : > { %v1815_v39 = vadd.f32 %v1814_v48, %v1784_v46  ;;  %v1747_v51 = vadd.f32 %v2385_v41, %v1746_v47 }
 0x1cd   : > { %v1816_v52 = vadd.f32 %v1815_v39, %v1785_v50 }
 0x1e3   : > { %v2388_v53 = vpop.f32.mrb[12].mxu0 }
 0x1e4   : > { %v1498_v54 = vpop.f32.mrb[13].mxu0  ;;  %v1788_v0 = vmul.f32 %v2388_v53, %v2388_v53 }
 0x1e5   : > { %v1748_v55 = vadd.f32 %v1747_v51, %v1498_v54  ;;  %v1786_v57 = vmul.f32 %v1498_v54, %v1498_v54  ;;  %v2389_v58 = vpop.f32.mrb[14].mxu0 }
 0x1e6   : > { %v2277_v9 = vpack.c.bf16 %v2389_v58, %v2388_v53  ;;  %v1501_v59 = vpop.f32.mrb[15].mxu0  ;;  %v1789_v3 = vmul.f32 %v2389_v58, %v2389_v58 }
 0x1e7   : > { %v1817_v43 = vadd.f32 %v1816_v52, %v1786_v57  ;;  %v2272_v60 = vpack.c.bf16 %v1501_v59, %v1498_v54  ;;  %v1749_v62 = vadd.f32 %v1748_v55, %v1501_v59  ;;  %v1787_v63 = vmul.f32 %v1501_v59, %v1501_v59 }
 0x1e8   : > { %2325 = vst [vmem:[%s3000_s26 + $0x38] sm:$0xff] %v2277_v9  }
 0x1e9   : > { %2324 = vst [vmem:[%s3000_s26 + $0x30] sm:$0xff] %v2272_v60   ;;  %v1750_v1 = vadd.f32 %v2388_v53, %v1749_v62  ;;  %v1818_v2 = vadd.f32 %v1817_v43, %v1787_v63 }
 0x1eb   : > { %v1819_v4 = vadd.f32 %v1818_v2, %v1788_v0  ;;  %v1751_v5 = vadd.f32 %v2389_v58, %v1750_v1 }
 0x1ed   : > { %v1820_v6 = vadd.f32 %v1819_v4, %v1789_v3 }
 0x203   : > { %v2392_v7 = vpop.f32.mrb[0].mxu1 }
 0x204   : > { %v1514_v8 = vpop.f32.mrb[1].mxu1  ;;  %v1792_v17 = vmul.f32 %v2392_v7, %v2392_v7 }
 0x205   : > { %v1752_v10 = vadd.f32 %v1751_v5, %v1514_v8  ;;  %v1790_v11 = vmul.f32 %v1514_v8, %v1514_v8  ;;  %v2393_v18 = vpop.f32.mrb[2].mxu1 }
 0x206   : > { %v2287_v49 = vpack.c.bf16 %v2393_v18, %v2392_v7  ;;  %v1517_v12 = vpop.f32.mrb[3].mxu1  ;;  %v1793_v21 = vmul.f32 %v2393_v18, %v2393_v18 }
 0x207   : > { %v1821_v13 = vadd.f32 %v1820_v6, %v1790_v11  ;;  %v2282_v14 = vpack.c.bf16 %v1517_v12, %v1514_v8  ;;  %v1753_v15 = vadd.f32 %v1752_v10, %v1517_v12  ;;  %v1791_v16 = vmul.f32 %v1517_v12, %v1517_v12 }
 0x208   : > { %2327 = vst [vmem:[%s3000_s26 + $0x48] sm:$0xff] %v2287_v49  }
 0x209   : > { %2326 = vst [vmem:[%s3000_s26 + $0x40] sm:$0xff] %v2282_v14   ;;  %v1754_v19 = vadd.f32 %v2392_v7, %v1753_v15  ;;  %v1822_v20 = vadd.f32 %v1821_v13, %v1791_v16 }
 0x20b   : > { %v1823_v22 = vadd.f32 %v1822_v20, %v1792_v17  ;;  %v1755_v23 = vadd.f32 %v2393_v18, %v1754_v19 }
 0x20d   : > { %v1824_v27 = vadd.f32 %v1823_v22, %v1793_v21 }
 0x223   : > { %v2396_v24 = vpop.f32.mrb[4].mxu1 }
 0x224   : > { %v1530_v25 = vpop.f32.mrb[5].mxu1  ;;  %v1796_v36 = vmul.f32 %v2396_v24, %v2396_v24 }
 0x225   : > { %v1756_v56 = vadd.f32 %v1755_v23, %v1530_v25  ;;  %v1794_v26 = vmul.f32 %v1530_v25, %v1530_v25  ;;  %v2397_v28 = vpop.f32.mrb[6].mxu1 }
 0x226   : > { %v2297_v29 = vpack.c.bf16 %v2397_v28, %v2396_v24  ;;  %v1533_v31 = vpop.f32.mrb[7].mxu1  ;;  %v1797_v41 = vmul.f32 %v2397_v28, %v2397_v28 }
 0x227   : > { %v1825_v32 = vadd.f32 %v1824_v27, %v1794_v26  ;;  %v2292_v30 = vpack.c.bf16 %v1533_v31, %v1530_v25  ;;  %v1757_v33 = vadd.f32 %v1756_v56, %v1533_v31  ;;  %v1795_v34 = vmul.f32 %v1533_v31, %v1533_v31 }
 0x228   : > { %2329 = vst [vmem:[%s3000_s26 + $0x58] sm:$0xff] %v2297_v29  }
 0x229   : > { %2328 = vst [vmem:[%s3000_s26 + $0x50] sm:$0xff] %v2292_v30   ;;  %v1758_v38 = vadd.f32 %v2396_v24, %v1757_v33  ;;  %v1826_v40 = vadd.f32 %v1825_v32, %v1795_v34 }
 0x22b   : > { %v1827_v42 = vadd.f32 %v1826_v40, %v1796_v36  ;;  %v1759_v35 = vadd.f32 %v2397_v28, %v1758_v38 }
 0x22d   : > { %v1828_v44 = vadd.f32 %v1827_v42, %v1797_v41 }
 0x243   : > { %v2400_v45 = vpop.f32.mrb[8].mxu1 }
 0x244   : > { %v1546_v61 = vpop.f32.mrb[9].mxu1  ;;  %v1800_v54 = vmul.f32 %v2400_v45, %v2400_v45 }
 0x245   : > { %v1760_v37 = vadd.f32 %v1759_v35, %v1546_v61  ;;  %v1798_v46 = vmul.f32 %v1546_v61, %v1546_v61  ;;  %v2401_v47 = vpop.f32.mrb[10].mxu1 }
 0x246   : > { %v2307_v48 = vpack.c.bf16 %v2401_v47, %v2400_v45  ;;  %v1549_v50 = vpop.f32.mrb[11].mxu1  ;;  %v1801_v58 = vmul.f32 %v2401_v47, %v2401_v47 }
 0x247   : > { %v1829_v39 = vadd.f32 %v1828_v44, %v1798_v46  ;;  %v2302_v51 = vpack.c.bf16 %v1549_v50, %v1546_v61  ;;  %v1761_v52 = vadd.f32 %v1760_v37, %v1549_v50  ;;  %v1799_v53 = vmul.f32 %v1549_v50, %v1549_v50 }
 0x248   : > { %2331 = vst [vmem:[%s3000_s26 + $0x68] sm:$0xff] %v2307_v48  }
 0x249   : > { %2330 = vst [vmem:[%s3000_s26 + $0x60] sm:$0xff] %v2302_v51   ;;  %v1762_v55 = vadd.f32 %v2400_v45, %v1761_v52  ;;  %v1830_v57 = vadd.f32 %v1829_v39, %v1799_v53 }
 0x24b   : > { %v1831_v9 = vadd.f32 %v1830_v57, %v1800_v54  ;;  %v1763_v59 = vadd.f32 %v2401_v47, %v1762_v55 }
 0x24d   : > { %v1832_v43 = vadd.f32 %v1831_v9, %v1801_v58 }
 0x260   : > { %v2404_v60 = vpop.f32.mrb[12].mxu1 }
 0x261   : > { %v1562_v62 = vpop.f32.mrb[13].mxu1  ;;  %v1804_v8 = vmul.f32 %v2404_v60, %v2404_v60 }
 0x262   : > { %v1764_v63 = vadd.f32 %v1763_v59, %v1562_v62  ;;  %v1802_v0 = vmul.f32 %v1562_v62, %v1562_v62  ;;  %v2405_v1 = vpop.f32.mrb[14].mxu1 }
 0x263   : > { %v2317_v2 = vpack.c.bf16 %v2405_v1, %v2404_v60  ;;  %v1565_v3 = vpop.f32.mrb[15].mxu1  ;;  %v1805_v18 = vmul.f32 %v2405_v1, %v2405_v1 }
 0x264   : > { %v1833_v4 = vadd.f32 %v1832_v43, %v1802_v0  ;;  %v2312_v5 = vpack.c.bf16 %v1565_v3, %v1562_v62  ;;  %v1765_v6 = vadd.f32 %v1764_v63, %v1565_v3  ;;  %v1803_v7 = vmul.f32 %v1565_v3, %v1565_v3 }
 0x265   : > { %2333 = vst [vmem:[%s3000_s26 + $0x78] sm:$0xff] %v2317_v2  }
 0x266   : > { %2332 = vst [vmem:[%s3000_s26 + $0x70] sm:$0xff] %v2312_v5   ;;  %v1766_v10 = vadd.f32 %v2404_v60, %v1765_v6  ;;  %v1834_v11 = vadd.f32 %v1833_v4, %v1803_v7 }
 0x268   : > { %v1767_v49 = vadd.f32 %v2405_v1, %v1766_v10  ;;  %v1835_v12 = vadd.f32 %v1834_v11, %v1804_v8 }
 0x26a   : > { %v1768_v13 = vrot.slane %v1767_v49, 4  ;;  %v1836_v14 = vadd.f32 %v1835_v12, %v1805_v18 }
 0x26c   : > { %v1769_v15 = vadd.f32 %v1768_v13, %v1767_v49  ;;  %v1837_v16 = vrot.slane %v1836_v14, 4 }
 0x26e   : > { %v1770_v17 = vrot.slane %v1769_v15, 2  ;;  %v1838_v19 = vadd.f32 %v1837_v16, %v1836_v14 }
 0x270   : > { %v1771_v20 = vadd.f32 %v1770_v17, %v1769_v15  ;;  %v1839_v21 = vrot.slane %v1838_v19, 2 }
 0x272   : > { %v1772_v22 = vrot.slane %v1771_v20, 1  ;;  %v1840_v23 = vadd.f32 %v1839_v21, %v1838_v19 }
 0x274   : > { %v1773_v27 = vadd.f32 %v1772_v22, %v1771_v20  ;;  %v1841_v24 = vrot.slane %v1840_v23, 1 }
 0x276   : > { %v1842_v25 = vadd.f32 %v1841_v24, %v1840_v23  ;;  %1843 = vst [vmem:[%s215_s30] sm:$0xff] %v1773_v27 }
 0x278   : > { %1844 = vst [vmem:[%s219_s7] sm:$0xff] %v1842_v25 }
 0x279 PF: > { %s15_s15 = sadd.s32 1, %s2454_s15  }
 0x27a   : > { %p12_p5 = scmp.ge.s32.totalorder %s15_s15, 4  }
 0x27c   :  { %14 = sbr.rel (!%p12_p5) target bundleno = 1 (0x1), region = 84 }

</bundles_post_ra>
